<compile_context>
chip_gen: v5e
topology: v5e:2x2
jax: 0.10.0
libtpu: 0.0.40
codegen_flags: <defaults>
</compile_context>

<pallas_src>
import jax
import jax.numpy as jnp
from jax.experimental import pallas as pl
from jax.experimental.pallas import tpu as pltpu


# ------------------------------ fused kernel -------------------------------

def make_cnn1_kernel(H, W, B, chans, out_dim):
    """Fused forward for one block of B samples.

    Refs (in order): x, (bw_i, bt_i) per conv layer, wh, bh, out, then scratch
    xp (halo staging), xpf_i per layer (tap-fused activations), actbuf, hs.
      x    : (B, H, W*chans[0])          activation, element [b, h, w*C + c]
      bw_i : (3*W*cin_i, W*cout_i)       stacked banded conv weights (kh-major)
      bt_i : (1, W*cout_i)               bias tiled along W
      wh   : (H*W*chans[-1], out_pad)    head weight, rows in (h, w, c) order
      bh   : (1, out_pad)
      out  : (1, B, out_pad)
      xp   : (H+16, W*c_in_max)          interior rows [8, 8+H), zero halos 7 / 8+H
      xpf_i: (B*H, 3*W*cin_i)            row (b,h), lane block kh = act_pad[h-1+kh]
      actbuf: (B*H, W*chans[-1])
      hs   : (B, H*W*chans[-1])
    """
    L = len(chans) - 1
    Wcmax = W * max(chans[:-1])
    Wcl = W * chans[-1]

    def kernel(*refs):
        x_ref = refs[0]
        conv_refs = refs[1:1 + 2 * L]
        wh_ref = refs[1 + 2 * L]
        bh_ref = refs[2 + 2 * L]
        o_ref = refs[3 + 2 * L]
        xp_ref = refs[4 + 2 * L]
        xpf_refs = refs[5 + 2 * L:5 + 3 * L]
        act_ref = refs[5 + 3 * L]
        hs_ref = refs[6 + 3 * L]

        # Vertical 'same'-padding halo: the tap copies only ever read rows 7 and
        # 8+H of xp as "outside" rows; they are never written, so zero their
        # 8-aligned sublane groups each step (16 rows, megacore-safe).
        zero8 = jnp.zeros((8, Wcmax), jnp.float32)
        xp_ref[0:8, :] = zero8
        xp_ref[8 + H:16 + H, :] = zero8

        act = None                                      # (B*H, W*cout) after each layer
        for i in range(L):
            cin, cout = chans[i], chans[i + 1]
            Wci = W * cin
            bw_ref = conv_refs[2 * i]                   # (3*W*cin, W*cout)
            bt_ref = conv_refs[2 * i + 1]               # (1, W*cout)
            xpf = xpf_refs[i]                           # (B*H, 3*W*cin)
            for b in range(B):
                a_b = x_ref[b] if i == 0 else act[b * H:(b + 1) * H, :]
                xp_ref[8:8 + H, 0:Wci] = a_b                               # aligned store
                xpf[b * H:(b + 1) * H, Wci:2 * Wci] = a_b                  # kh = 1 tap
                xpf[b * H:(b + 1) * H, 0:Wci] = xp_ref[7:7 + H, 0:Wci]     # kh = 0 (shifted read)
                xpf[b * H:(b + 1) * H, 2 * Wci:3 * Wci] = xp_ref[9:9 + H, 0:Wci]  # kh = 2
            # One wide-K MXU matmul per layer for all B samples (M = B*H).
            acc = jnp.dot(xpf[...], bw_ref[...], preferred_element_type=jnp.float32)
            act = jnp.maximum(acc + bt_ref[...], 0.0)                      # bias + ReLU

        # Flatten (b,h,w,c) -> hs[b, h*W*C + w*C + c]: H strided reads (load
        # slots) + H aligned (B, Wcl) stores instead of B*H single-row stores.
        act_ref[...] = act
        for h in range(H):
            hs_ref[:, h * Wcl:(h + 1) * Wcl] = act_ref[pl.ds(h, B, stride=H), :]

        # Batched linear head (single (B, D) @ (D, 128) dot) + masked softmax.
        logits = jnp.dot(hs_ref[...], wh_ref[...],
                         preferred_element_type=jnp.float32) + bh_ref[...]
        col = jax.lax.broadcasted_iota(jnp.int32, logits.shape, 1)
        logits = jnp.where(col < out_dim, logits, -1e30)   # ignore pad lanes (f32)
        m = jnp.max(logits, axis=-1, keepdims=True)
        e = jnp.exp(logits - m)
        s = jnp.sum(e, axis=-1, keepdims=True)
        o_ref[0] = (e / s).astype(o_ref.dtype)

    return kernel


# ------------------------------- wrappers -----------------------------------

def init_params(key, img_chan, hidden_chan, img_dim, out_dim, num_layers,
                dtype=jnp.float32):
    """PyTorch-style uniform(+-1/sqrt(fan_in)) init.

    Conv weights are HWIO (3,3,Cin,Cout) (torch OIHW -> permute(2,3,1,0)).
    Head weight is (D, out_dim) with rows in torch's (C,H,W) flatten order
    (torch (out_dim, D) -> transpose).  Loading trained torch weights requires
    exactly these permutations.
    """
    params = {"convs": []}
    curr = img_chan
    for _ in range(num_layers):
        key, k1, k2 = jax.random.split(key, 3)
        bound = (curr * 9) ** -0.5
        w = jax.random.uniform(k1, (3, 3, curr, hidden_chan), dtype, -bound, bound)
        b = jax.random.uniform(k2, (hidden_chan,), dtype, -bound, bound)
        params["convs"].append((w, b))
        curr = hidden_chan
    D = img_dim * img_dim * curr
    key, k1, k2 = jax.random.split(key, 3)
    bound = D ** -0.5
    wh = jax.random.uniform(k1, (D, out_dim), dtype, -bound, bound)
    bh = jax.random.uniform(k2, (out_dim,), dtype, -bound, bound)
    params["head"] = (wh, bh)
    return params


def prepare_params(params, H, W, out_pad):
    """One-time layout prep for the fused kernel.

    Per conv layer, build the tap-stacked banded matrix
      BW[kh*W*Cin + w'*Cin + c, w*Cout + co] = W[kh, kw, c, co], w' = w + kw - 1
    so conv(x)[b,h,w,co] = xpf[(b,h), :] @ BW in the (B*H, 3*W*Cin) layout
    (horizontal zero-padding encoded by the band, vertical by the halo rows).
    The head weight rows are permuted from torch's (C,H,W) flatten order to the
    kernel's (H,W,C) order and zero-padded to out_pad output lanes.
    """
    kp = {"convs": []}
    for w_hwio, b in params["convs"]:
        _, _, cin, cout = w_hwio.shape
        bws = []
        for kh in range(3):
            bw = jnp.zeros((W * cin, W * cout), w_hwio.dtype)
            for kw in range(3):
                bw = bw + jnp.kron(
                    jnp.eye(W, k=-(kw - 1), dtype=w_hwio.dtype), w_hwio[kh, kw])
            bws.append(bw)
        bw3 = jnp.concatenate(bws, axis=0)                    # (3*W*cin, W*cout)
        bt = jnp.tile(b, W).reshape(1, W * cout)              # (1, W*cout)
        kp["convs"].append((bw3, bt))
    wh, bh = params["head"]
    D, out_dim = wh.shape
    C = D // (H * W)
    wh_hwc = wh.reshape(C, H, W, out_dim).transpose(1, 2, 0, 3).reshape(D, out_dim)
    wh_p = jnp.zeros((D, out_pad), wh.dtype).at[:, :out_dim].set(wh_hwc)
    bh_p = jnp.zeros((1, out_pad), bh.dtype).at[0, :out_dim].set(bh)
    kp["head"] = (wh_p, bh_p)
    return kp


def cnn1_forward(x_nchw, kparams, img_dim, chans, out_dim, out_pad, block_b):
    """Full CNN1 forward as a single fused pallas_call. x_nchw: (N, C, H, W)."""
    N = x_nchw.shape[0]
    H = W = img_dim
    L = len(chans) - 1
    D = H * W * chans[-1]
    c_in_max = max(chans[:-1])
    B = block_b
    assert H % 8 == 0, "kernel assumes H is a multiple of 8 (sublane alignment)"
    assert N % B == 0, "batch must be divisible by the per-step block"

    # NCHW -> lane-dense (N, H, W*C) once, before the single fused kernel.
    x = jnp.transpose(x_nchw, (0, 2, 3, 1)).reshape(N, H, W * chans[0])

    inputs = [x]
    in_specs = [pl.BlockSpec((B, H, W * chans[0]), lambda n: (n, 0, 0))]
    for bw, bt in kparams["convs"]:
        inputs += [bw, bt]
        # Constant index maps -> weights DMA'd once per buffer.  At production
        # sizes on v7x, add pipeline_mode=pl.Buffered(1) here to avoid
        # double-buffering the (growing) head weight in 64 MiB VMEM.
        in_specs += [pl.BlockSpec(bw.shape, lambda n: (0, 0)),
                     pl.BlockSpec(bt.shape, lambda n: (0, 0))]
    wh, bh = kparams["head"]
    inputs += [wh, bh]
    in_specs += [pl.BlockSpec(wh.shape, lambda n: (0, 0)),
                 pl.BlockSpec(bh.shape, lambda n: (0, 0))]

    scratch = [pltpu.VMEM((H + 16, W * c_in_max), jnp.float32)]        # halo staging
    scratch += [pltpu.VMEM((B * H, 3 * W * chans[i]), jnp.float32)     # tap-fused acts
                for i in range(L)]
    scratch += [pltpu.VMEM((B * H, W * chans[-1]), jnp.float32),       # last-layer acts
                pltpu.VMEM((B, D), jnp.float32)]                       # flattened head input

    out = pl.pallas_call(
        make_cnn1_kernel(H, W, B, chans, out_dim),
        out_shape=jax.ShapeDtypeStruct((N // B, B, out_pad), x_nchw.dtype),
        grid=(N // B,),
        in_specs=in_specs,
        out_specs=pl.BlockSpec((1, B, out_pad), lambda n: (n, 0, 0)),
        scratch_shapes=scratch,
        compiler_params=pltpu.CompilerParams(
            dimension_semantics=("parallel",)),            # batch blocks over 2 TCs on v7x
    )(*inputs)
    return out.reshape(N, out_pad)[:, :out_dim]


def cnn1_reference(x_nchw, params):
    """Pure-XLA reference of the PyTorch CNN1 forward (for validation)."""
    N = x_nchw.shape[0]
    x = jnp.transpose(x_nchw, (0, 2, 3, 1))
    for w_hwio, b in params["convs"]:
        x = jax.lax.conv_general_dilated(
            x, w_hwio, window_strides=(1, 1), padding=((1, 1), (1, 1)),
            dimension_numbers=("NHWC", "HWIO", "NHWC"),
            precision=jax.lax.Precision.HIGHEST)
        x = jnp.maximum(x + b, 0.0)
    x = jnp.transpose(x, (0, 3, 1, 2)).reshape(N, -1)         # torch Flatten: (C,H,W)
    wh, bh = params["head"]
    logits = jnp.dot(x, wh, precision=jax.lax.Precision.HIGHEST) + bh
    return jax.nn.softmax(logits, axis=1)


# TODO(synk): Hebbian weight-update rules / layer.next chaining are training-time
# mechanics and are not part of forward(), so they are not implemented.

if __name__ == "__main__":
    key = jax.random.PRNGKey(0)
    N, C, IMG, HIDDEN, OUT, NUM_LAYERS = 8, 4, 16, 8, 10, 2
    OUT_PAD = 128
    BLOCK_B = 4                      # samples per grid step -> grid=(2,)

    kx, kp = jax.random.split(key)
    x = jax.random.normal(kx, (N, C, IMG, IMG), jnp.float32)
    params = init_params(kp, C, HIDDEN, IMG, OUT, NUM_LAYERS)
    kparams = prepare_params(params, IMG, IMG, OUT_PAD)
    chans = (C,) + (HIDDEN,) * NUM_LAYERS

    fwd = jax.jit(lambda xx: cnn1_forward(
        xx, kparams, IMG, chans, OUT, OUT_PAD, BLOCK_B))
    y = fwd(x)
    jax.block_until_ready(y)

    assert y.shape == (N, OUT), y.shape
    assert bool(jnp.allclose(jnp.sum(y, axis=1), 1.0, atol=1e-5))
    y_ref = cnn1_reference(x, params)
    assert bool(jnp.allclose(y, y_ref, atol=1e-4, rtol=1e-3)), (
        float(jnp.max(jnp.abs(y - y_ref))))
    print("KERNEL_OK")
</pallas_src>

<mosaic_0001>
module attributes {stable_mosaic.version = 11 : i64} {
  func.func @kernel(%arg0: i32, %arg1: memref<4x16x64xf32, #tpu.memory_space<vmem>>, %arg2: memref<192x128xf32, #tpu.memory_space<vmem>>, %arg3: memref<1x128xf32, #tpu.memory_space<vmem>>, %arg4: memref<384x128xf32, #tpu.memory_space<vmem>>, %arg5: memref<1x128xf32, #tpu.memory_space<vmem>>, %arg6: memref<2048x128xf32, #tpu.memory_space<vmem>>, %arg7: memref<1x128xf32, #tpu.memory_space<vmem>>, %arg8: memref<1x4x128xf32, #tpu.memory_space<vmem>>, %arg9: memref<32x128xf32, #tpu.memory_space<vmem>>, %arg10: memref<64x192xf32, #tpu.memory_space<vmem>>, %arg11: memref<64x384xf32, #tpu.memory_space<vmem>>, %arg12: memref<64x128xf32, #tpu.memory_space<vmem>>, %arg13: memref<4x2048xf32, #tpu.memory_space<vmem>>) attributes {dimension_semantics = [#tpu.dimension_semantics<parallel>], iteration_bounds = array<i64: 2>, scalar_prefetch = 0 : i64, scratch_operands = 5 : i64, tpu.core_type = #tpu.core_type<tc>, window_params = [{transform_indices = @transform_0, window_bounds = array<i64: 4, 16, 64>}, {pipeline_mode = #tpu.pipeline_mode<synchronous>, transform_indices = @transform_1, window_bounds = array<i64: 192, 128>}, {pipeline_mode = #tpu.pipeline_mode<synchronous>, transform_indices = @transform_2, window_bounds = array<i64: 1, 128>}, {pipeline_mode = #tpu.pipeline_mode<synchronous>, transform_indices = @transform_3, window_bounds = array<i64: 384, 128>}, {pipeline_mode = #tpu.pipeline_mode<synchronous>, transform_indices = @transform_4, window_bounds = array<i64: 1, 128>}, {pipeline_mode = #tpu.pipeline_mode<synchronous>, transform_indices = @transform_5, window_bounds = array<i64: 2048, 128>}, {pipeline_mode = #tpu.pipeline_mode<synchronous>, transform_indices = @transform_6, window_bounds = array<i64: 1, 128>}, {transform_indices = @transform_7, window_bounds = array<i64: 1, 4, 128>}]} {
    %cst = arith.constant 0.000000e+00 : f32
    %0 = vector.broadcast %cst : f32 to vector<8x128xf32>
    %c0 = arith.constant 0 : index
    %c0_0 = arith.constant 0 : index
    %1 = vector.load %arg9[%c0, %c0_0] : memref<32x128xf32, #tpu.memory_space<vmem>>, vector<8x128xf32>
    tpu.vector_store %arg9[%c0, %c0_0], %0 {strides = array<i32>} : memref<32x128xf32, #tpu.memory_space<vmem>>, vector<8x128xf32>,
    %c24 = arith.constant 24 : index
    %c0_1 = arith.constant 0 : index
    %2 = vector.load %arg9[%c24, %c0_1] : memref<32x128xf32, #tpu.memory_space<vmem>>, vector<8x128xf32>
    tpu.vector_store %arg9[%c24, %c0_1], %0 {strides = array<i32>} : memref<32x128xf32, #tpu.memory_space<vmem>>, vector<8x128xf32>,
    %c0_2 = arith.constant 0 : index
    %c0_3 = arith.constant 0 : index
    %c0_4 = arith.constant 0 : index
    %3 = vector.load %arg1[%c0_2, %c0_3, %c0_4] : memref<4x16x64xf32, #tpu.memory_space<vmem>>, vector<1x16x64xf32>
    %4 = vector.shape_cast %3 : vector<1x16x64xf32> to vector<16x64xf32>
    %c8 = arith.constant 8 : index
    %c0_5 = arith.constant 0 : index
    %5 = vector.load %arg9[%c8, %c0_5] : memref<32x128xf32, #tpu.memory_space<vmem>>, vector<16x64xf32>
    tpu.vector_store %arg9[%c8, %c0_5], %4 {strides = array<i32>} : memref<32x128xf32, #tpu.memory_space<vmem>>, vector<16x64xf32>,
    %c0_6 = arith.constant 0 : index
    %c64 = arith.constant 64 : index
    %6 = vector.load %arg10[%c0_6, %c64] : memref<64x192xf32, #tpu.memory_space<vmem>>, vector<16x64xf32>
    tpu.vector_store %arg10[%c0_6, %c64], %4 {strides = array<i32>} : memref<64x192xf32, #tpu.memory_space<vmem>>, vector<16x64xf32>,
    %c7 = arith.constant 7 : index
    %c0_7 = arith.constant 0 : index
    %7 = vector.load %arg9[%c7, %c0_7] : memref<32x128xf32, #tpu.memory_space<vmem>>, vector<16x64xf32>
    %c0_8 = arith.constant 0 : index
    %c0_9 = arith.constant 0 : index
    %8 = vector.load %arg10[%c0_8, %c0_9] : memref<64x192xf32, #tpu.memory_space<vmem>>, vector<16x64xf32>
    tpu.vector_store %arg10[%c0_8, %c0_9], %7 {strides = array<i32>} : memref<64x192xf32, #tpu.memory_space<vmem>>, vector<16x64xf32>,
    %c9 = arith.constant 9 : index
    %c0_10 = arith.constant 0 : index
    %9 = vector.load %arg9[%c9, %c0_10] : memref<32x128xf32, #tpu.memory_space<vmem>>, vector<16x64xf32>
    %c0_11 = arith.constant 0 : index
    %c128 = arith.constant 128 : index
    %10 = vector.load %arg10[%c0_11, %c128] : memref<64x192xf32, #tpu.memory_space<vmem>>, vector<16x64xf32>
    tpu.vector_store %arg10[%c0_11, %c128], %9 {strides = array<i32>} : memref<64x192xf32, #tpu.memory_space<vmem>>, vector<16x64xf32>,
    %c1 = arith.constant 1 : index
    %c0_12 = arith.constant 0 : index
    %c0_13 = arith.constant 0 : index
    %11 = vector.load %arg1[%c1, %c0_12, %c0_13] : memref<4x16x64xf32, #tpu.memory_space<vmem>>, vector<1x16x64xf32>
    %12 = vector.shape_cast %11 : vector<1x16x64xf32> to vector<16x64xf32>
    %c8_14 = arith.constant 8 : index
    %c0_15 = arith.constant 0 : index
    %13 = vector.load %arg9[%c8_14, %c0_15] : memref<32x128xf32, #tpu.memory_space<vmem>>, vector<16x64xf32>
    tpu.vector_store %arg9[%c8_14, %c0_15], %12 {strides = array<i32>} : memref<32x128xf32, #tpu.memory_space<vmem>>, vector<16x64xf32>,
    %c16 = arith.constant 16 : index
    %c64_16 = arith.constant 64 : index
    %14 = vector.load %arg10[%c16, %c64_16] : memref<64x192xf32, #tpu.memory_space<vmem>>, vector<16x64xf32>
    tpu.vector_store %arg10[%c16, %c64_16], %12 {strides = array<i32>} : memref<64x192xf32, #tpu.memory_space<vmem>>, vector<16x64xf32>,
    %c7_17 = arith.constant 7 : index
    %c0_18 = arith.constant 0 : index
    %15 = vector.load %arg9[%c7_17, %c0_18] : memref<32x128xf32, #tpu.memory_space<vmem>>, vector<16x64xf32>
    %c16_19 = arith.constant 16 : index
    %c0_20 = arith.constant 0 : index
    %16 = vector.load %arg10[%c16_19, %c0_20] : memref<64x192xf32, #tpu.memory_space<vmem>>, vector<16x64xf32>
    tpu.vector_store %arg10[%c16_19, %c0_20], %15 {strides = array<i32>} : memref<64x192xf32, #tpu.memory_space<vmem>>, vector<16x64xf32>,
    %c9_21 = arith.constant 9 : index
    %c0_22 = arith.constant 0 : index
    %17 = vector.load %arg9[%c9_21, %c0_22] : memref<32x128xf32, #tpu.memory_space<vmem>>, vector<16x64xf32>
    %c16_23 = arith.constant 16 : index
    %c128_24 = arith.constant 128 : index
    %18 = vector.load %arg10[%c16_23, %c128_24] : memref<64x192xf32, #tpu.memory_space<vmem>>, vector<16x64xf32>
    tpu.vector_store %arg10[%c16_23, %c128_24], %17 {strides = array<i32>} : memref<64x192xf32, #tpu.memory_space<vmem>>, vector<16x64xf32>,
    %c2 = arith.constant 2 : index
    %c0_25 = arith.constant 0 : index
    %c0_26 = arith.constant 0 : index
    %19 = vector.load %arg1[%c2, %c0_25, %c0_26] : memref<4x16x64xf32, #tpu.memory_space<vmem>>, vector<1x16x64xf32>
    %20 = vector.shape_cast %19 : vector<1x16x64xf32> to vector<16x64xf32>
    %c8_27 = arith.constant 8 : index
    %c0_28 = arith.constant 0 : index
    %21 = vector.load %arg9[%c8_27, %c0_28] : memref<32x128xf32, #tpu.memory_space<vmem>>, vector<16x64xf32>
    tpu.vector_store %arg9[%c8_27, %c0_28], %20 {strides = array<i32>} : memref<32x128xf32, #tpu.memory_space<vmem>>, vector<16x64xf32>,
    %c32 = arith.constant 32 : index
    %c64_29 = arith.constant 64 : index
    %22 = vector.load %arg10[%c32, %c64_29] : memref<64x192xf32, #tpu.memory_space<vmem>>, vector<16x64xf32>
    tpu.vector_store %arg10[%c32, %c64_29], %20 {strides = array<i32>} : memref<64x192xf32, #tpu.memory_space<vmem>>, vector<16x64xf32>,
    %c7_30 = arith.constant 7 : index
    %c0_31 = arith.constant 0 : index
    %23 = vector.load %arg9[%c7_30, %c0_31] : memref<32x128xf32, #tpu.memory_space<vmem>>, vector<16x64xf32>
    %c32_32 = arith.constant 32 : index
    %c0_33 = arith.constant 0 : index
    %24 = vector.load %arg10[%c32_32, %c0_33] : memref<64x192xf32, #tpu.memory_space<vmem>>, vector<16x64xf32>
    tpu.vector_store %arg10[%c32_32, %c0_33], %23 {strides = array<i32>} : memref<64x192xf32, #tpu.memory_space<vmem>>, vector<16x64xf32>,
    %c9_34 = arith.constant 9 : index
    %c0_35 = arith.constant 0 : index
    %25 = vector.load %arg9[%c9_34, %c0_35] : memref<32x128xf32, #tpu.memory_space<vmem>>, vector<16x64xf32>
    %c32_36 = arith.constant 32 : index
    %c128_37 = arith.constant 128 : index
    %26 = vector.load %arg10[%c32_36, %c128_37] : memref<64x192xf32, #tpu.memory_space<vmem>>, vector<16x64xf32>
    tpu.vector_store %arg10[%c32_36, %c128_37], %25 {strides = array<i32>} : memref<64x192xf32, #tpu.memory_space<vmem>>, vector<16x64xf32>,
    %c3 = arith.constant 3 : index
    %c0_38 = arith.constant 0 : index
    %c0_39 = arith.constant 0 : index
    %27 = vector.load %arg1[%c3, %c0_38, %c0_39] : memref<4x16x64xf32, #tpu.memory_space<vmem>>, vector<1x16x64xf32>
    %28 = vector.shape_cast %27 : vector<1x16x64xf32> to vector<16x64xf32>
    %c8_40 = arith.constant 8 : index
    %c0_41 = arith.constant 0 : index
    %29 = vector.load %arg9[%c8_40, %c0_41] : memref<32x128xf32, #tpu.memory_space<vmem>>, vector<16x64xf32>
    tpu.vector_store %arg9[%c8_40, %c0_41], %28 {strides = array<i32>} : memref<32x128xf32, #tpu.memory_space<vmem>>, vector<16x64xf32>,
    %c48 = arith.constant 48 : index
    %c64_42 = arith.constant 64 : index
    %30 = vector.load %arg10[%c48, %c64_42] : memref<64x192xf32, #tpu.memory_space<vmem>>, vector<16x64xf32>
    tpu.vector_store %arg10[%c48, %c64_42], %28 {strides = array<i32>} : memref<64x192xf32, #tpu.memory_space<vmem>>, vector<16x64xf32>,
    %c7_43 = arith.constant 7 : index
    %c0_44 = arith.constant 0 : index
    %31 = vector.load %arg9[%c7_43, %c0_44] : memref<32x128xf32, #tpu.memory_space<vmem>>, vector<16x64xf32>
    %c48_45 = arith.constant 48 : index
    %c0_46 = arith.constant 0 : index
    %32 = vector.load %arg10[%c48_45, %c0_46] : memref<64x192xf32, #tpu.memory_space<vmem>>, vector<16x64xf32>
    tpu.vector_store %arg10[%c48_45, %c0_46], %31 {strides = array<i32>} : memref<64x192xf32, #tpu.memory_space<vmem>>, vector<16x64xf32>,
    %c9_47 = arith.constant 9 : index
    %c0_48 = arith.constant 0 : index
    %33 = vector.load %arg9[%c9_47, %c0_48] : memref<32x128xf32, #tpu.memory_space<vmem>>, vector<16x64xf32>
    %c48_49 = arith.constant 48 : index
    %c128_50 = arith.constant 128 : index
    %34 = vector.load %arg10[%c48_49, %c128_50] : memref<64x192xf32, #tpu.memory_space<vmem>>, vector<16x64xf32>
    tpu.vector_store %arg10[%c48_49, %c128_50], %33 {strides = array<i32>} : memref<64x192xf32, #tpu.memory_space<vmem>>, vector<16x64xf32>,
    %c0_51 = arith.constant 0 : index
    %c0_52 = arith.constant 0 : index
    %35 = vector.load %arg10[%c0_51, %c0_52] : memref<64x192xf32, #tpu.memory_space<vmem>>, vector<64x192xf32>
    %c0_53 = arith.constant 0 : index
    %c0_54 = arith.constant 0 : index
    %36 = vector.load %arg2[%c0_53, %c0_54] : memref<192x128xf32, #tpu.memory_space<vmem>>, vector<192x128xf32>
    %cst_55 = arith.constant dense<0.000000e+00> : vector<64x128xf32>
    %37 = tpu.matmul %35, %36, %cst_55 {dimension_numbers = #tpu.dot_dimension_numbers<[1], [0], [0], [1], [0, 0, 1, 1], [], []>} : vector<64x192xf32>, vector<192x128xf32>, vector<64x128xf32> -> vector<64x128xf32>
    %c0_56 = arith.constant 0 : index
    %c0_57 = arith.constant 0 : index
    %38 = vector.load %arg3[%c0_56, %c0_57] : memref<1x128xf32, #tpu.memory_space<vmem>>, vector<1x128xf32>
    %39 = vector.broadcast %38 : vector<1x128xf32> to vector<64x128xf32>
    %40 = arith.addf %37, %39 : vector<64x128xf32>
    %cst_58 = arith.constant 0.000000e+00 : f32
    %41 = vector.broadcast %cst_58 : f32 to vector<64x128xf32>
    %42 = arith.maximumf %40, %41 : vector<64x128xf32>
    %43 = vector.extract_strided_slice %42 {offsets = [0, 0], sizes = [16, 128], strides = [1, 1]} : vector<64x128xf32> to vector<16x128xf32>
    %c8_59 = arith.constant 8 : index
    %c0_60 = arith.constant 0 : index
    %44 = vector.load %arg9[%c8_59, %c0_60] : memref<32x128xf32, #tpu.memory_space<vmem>>, vector<16x128xf32>
    tpu.vector_store %arg9[%c8_59, %c0_60], %43 {strides = array<i32>} : memref<32x128xf32, #tpu.memory_space<vmem>>, vector<16x128xf32>,
    %c0_61 = arith.constant 0 : index
    %c128_62 = arith.constant 128 : index
    %45 = vector.load %arg11[%c0_61, %c128_62] : memref<64x384xf32, #tpu.memory_space<vmem>>, vector<16x128xf32>
    tpu.vector_store %arg11[%c0_61, %c128_62], %43 {strides = array<i32>} : memref<64x384xf32, #tpu.memory_space<vmem>>, vector<16x128xf32>,
    %c7_63 = arith.constant 7 : index
    %c0_64 = arith.constant 0 : index
    %46 = vector.load %arg9[%c7_63, %c0_64] : memref<32x128xf32, #tpu.memory_space<vmem>>, vector<16x128xf32>
    %c0_65 = arith.constant 0 : index
    %c0_66 = arith.constant 0 : index
    %47 = vector.load %arg11[%c0_65, %c0_66] : memref<64x384xf32, #tpu.memory_space<vmem>>, vector<16x128xf32>
    tpu.vector_store %arg11[%c0_65, %c0_66], %46 {strides = array<i32>} : memref<64x384xf32, #tpu.memory_space<vmem>>, vector<16x128xf32>,
    %c9_67 = arith.constant 9 : index
    %c0_68 = arith.constant 0 : index
    %48 = vector.load %arg9[%c9_67, %c0_68] : memref<32x128xf32, #tpu.memory_space<vmem>>, vector<16x128xf32>
    %c0_69 = arith.constant 0 : index
    %c256 = arith.constant 256 : index
    %49 = vector.load %arg11[%c0_69, %c256] : memref<64x384xf32, #tpu.memory_space<vmem>>, vector<16x128xf32>
    tpu.vector_store %arg11[%c0_69, %c256], %48 {strides = array<i32>} : memref<64x384xf32, #tpu.memory_space<vmem>>, vector<16x128xf32>,
    %50 = vector.extract_strided_slice %42 {offsets = [16, 0], sizes = [16, 128], strides = [1, 1]} : vector<64x128xf32> to vector<16x128xf32>
    %c8_70 = arith.constant 8 : index
    %c0_71 = arith.constant 0 : index
    %51 = vector.load %arg9[%c8_70, %c0_71] : memref<32x128xf32, #tpu.memory_space<vmem>>, vector<16x128xf32>
    tpu.vector_store %arg9[%c8_70, %c0_71], %50 {strides = array<i32>} : memref<32x128xf32, #tpu.memory_space<vmem>>, vector<16x128xf32>,
    %c16_72 = arith.constant 16 : index
    %c128_73 = arith.constant 128 : index
    %52 = vector.load %arg11[%c16_72, %c128_73] : memref<64x384xf32, #tpu.memory_space<vmem>>, vector<16x128xf32>
    tpu.vector_store %arg11[%c16_72, %c128_73], %50 {strides = array<i32>} : memref<64x384xf32, #tpu.memory_space<vmem>>, vector<16x128xf32>,
    %c7_74 = arith.constant 7 : index
    %c0_75 = arith.constant 0 : index
    %53 = vector.load %arg9[%c7_74, %c0_75] : memref<32x128xf32, #tpu.memory_space<vmem>>, vector<16x128xf32>
    %c16_76 = arith.constant 16 : index
    %c0_77 = arith.constant 0 : index
    %54 = vector.load %arg11[%c16_76, %c0_77] : memref<64x384xf32, #tpu.memory_space<vmem>>, vector<16x128xf32>
    tpu.vector_store %arg11[%c16_76, %c0_77], %53 {strides = array<i32>} : memref<64x384xf32, #tpu.memory_space<vmem>>, vector<16x128xf32>,
    %c9_78 = arith.constant 9 : index
    %c0_79 = arith.constant 0 : index
    %55 = vector.load %arg9[%c9_78, %c0_79] : memref<32x128xf32, #tpu.memory_space<vmem>>, vector<16x128xf32>
    %c16_80 = arith.constant 16 : index
    %c256_81 = arith.constant 256 : index
    %56 = vector.load %arg11[%c16_80, %c256_81] : memref<64x384xf32, #tpu.memory_space<vmem>>, vector<16x128xf32>
    tpu.vector_store %arg11[%c16_80, %c256_81], %55 {strides = array<i32>} : memref<64x384xf32, #tpu.memory_space<vmem>>, vector<16x128xf32>,
    %57 = vector.extract_strided_slice %42 {offsets = [32, 0], sizes = [16, 128], strides = [1, 1]} : vector<64x128xf32> to vector<16x128xf32>
    %c8_82 = arith.constant 8 : index
    %c0_83 = arith.constant 0 : index
    %58 = vector.load %arg9[%c8_82, %c0_83] : memref<32x128xf32, #tpu.memory_space<vmem>>, vector<16x128xf32>
    tpu.vector_store %arg9[%c8_82, %c0_83], %57 {strides = array<i32>} : memref<32x128xf32, #tpu.memory_space<vmem>>, vector<16x128xf32>,
    %c32_84 = arith.constant 32 : index
    %c128_85 = arith.constant 128 : index
    %59 = vector.load %arg11[%c32_84, %c128_85] : memref<64x384xf32, #tpu.memory_space<vmem>>, vector<16x128xf32>
    tpu.vector_store %arg11[%c32_84, %c128_85], %57 {strides = array<i32>} : memref<64x384xf32, #tpu.memory_space<vmem>>, vector<16x128xf32>,
    %c7_86 = arith.constant 7 : index
    %c0_87 = arith.constant 0 : index
    %60 = vector.load %arg9[%c7_86, %c0_87] : memref<32x128xf32, #tpu.memory_space<vmem>>, vector<16x128xf32>
    %c32_88 = arith.constant 32 : index
    %c0_89 = arith.constant 0 : index
    %61 = vector.load %arg11[%c32_88, %c0_89] : memref<64x384xf32, #tpu.memory_space<vmem>>, vector<16x128xf32>
    tpu.vector_store %arg11[%c32_88, %c0_89], %60 {strides = array<i32>} : memref<64x384xf32, #tpu.memory_space<vmem>>, vector<16x128xf32>,
    %c9_90 = arith.constant 9 : index
    %c0_91 = arith.constant 0 : index
    %62 = vector.load %arg9[%c9_90, %c0_91] : memref<32x128xf32, #tpu.memory_space<vmem>>, vector<16x128xf32>
    %c32_92 = arith.constant 32 : index
    %c256_93 = arith.constant 256 : index
    %63 = vector.load %arg11[%c32_92, %c256_93] : memref<64x384xf32, #tpu.memory_space<vmem>>, vector<16x128xf32>
    tpu.vector_store %arg11[%c32_92, %c256_93], %62 {strides = array<i32>} : memref<64x384xf32, #tpu.memory_space<vmem>>, vector<16x128xf32>,
    %64 = vector.extract_strided_slice %42 {offsets = [48, 0], sizes = [16, 128], strides = [1, 1]} : vector<64x128xf32> to vector<16x128xf32>
    %c8_94 = arith.constant 8 : index
    %c0_95 = arith.constant 0 : index
    %65 = vector.load %arg9[%c8_94, %c0_95] : memref<32x128xf32, #tpu.memory_space<vmem>>, vector<16x128xf32>
    tpu.vector_store %arg9[%c8_94, %c0_95], %64 {strides = array<i32>} : memref<32x128xf32, #tpu.memory_space<vmem>>, vector<16x128xf32>,
    %c48_96 = arith.constant 48 : index
    %c128_97 = arith.constant 128 : index
    %66 = vector.load %arg11[%c48_96, %c128_97] : memref<64x384xf32, #tpu.memory_space<vmem>>, vector<16x128xf32>
    tpu.vector_store %arg11[%c48_96, %c128_97], %64 {strides = array<i32>} : memref<64x384xf32, #tpu.memory_space<vmem>>, vector<16x128xf32>,
    %c7_98 = arith.constant 7 : index
    %c0_99 = arith.constant 0 : index
    %67 = vector.load %arg9[%c7_98, %c0_99] : memref<32x128xf32, #tpu.memory_space<vmem>>, vector<16x128xf32>
    %c48_100 = arith.constant 48 : index
    %c0_101 = arith.constant 0 : index
    %68 = vector.load %arg11[%c48_100, %c0_101] : memref<64x384xf32, #tpu.memory_space<vmem>>, vector<16x128xf32>
    tpu.vector_store %arg11[%c48_100, %c0_101], %67 {strides = array<i32>} : memref<64x384xf32, #tpu.memory_space<vmem>>, vector<16x128xf32>,
    %c9_102 = arith.constant 9 : index
    %c0_103 = arith.constant 0 : index
    %69 = vector.load %arg9[%c9_102, %c0_103] : memref<32x128xf32, #tpu.memory_space<vmem>>, vector<16x128xf32>
    %c48_104 = arith.constant 48 : index
    %c256_105 = arith.constant 256 : index
    %70 = vector.load %arg11[%c48_104, %c256_105] : memref<64x384xf32, #tpu.memory_space<vmem>>, vector<16x128xf32>
    tpu.vector_store %arg11[%c48_104, %c256_105], %69 {strides = array<i32>} : memref<64x384xf32, #tpu.memory_space<vmem>>, vector<16x128xf32>,
    %c0_106 = arith.constant 0 : index
    %c0_107 = arith.constant 0 : index
    %71 = vector.load %arg11[%c0_106, %c0_107] : memref<64x384xf32, #tpu.memory_space<vmem>>, vector<64x384xf32>
    %c0_108 = arith.constant 0 : index
    %c0_109 = arith.constant 0 : index
    %72 = vector.load %arg4[%c0_108, %c0_109] : memref<384x128xf32, #tpu.memory_space<vmem>>, vector<384x128xf32>
    %cst_110 = arith.constant dense<0.000000e+00> : vector<64x128xf32>
    %73 = tpu.matmul %71, %72, %cst_110 {dimension_numbers = #tpu.dot_dimension_numbers<[1], [0], [0], [1], [0, 0, 1, 1], [], []>} : vector<64x384xf32>, vector<384x128xf32>, vector<64x128xf32> -> vector<64x128xf32>
    %c0_111 = arith.constant 0 : index
    %c0_112 = arith.constant 0 : index
    %74 = vector.load %arg5[%c0_111, %c0_112] : memref<1x128xf32, #tpu.memory_space<vmem>>, vector<1x128xf32>
    %75 = vector.broadcast %74 : vector<1x128xf32> to vector<64x128xf32>
    %76 = arith.addf %73, %75 : vector<64x128xf32>
    %cst_113 = arith.constant 0.000000e+00 : f32
    %77 = vector.broadcast %cst_113 : f32 to vector<64x128xf32>
    %78 = arith.maximumf %76, %77 : vector<64x128xf32>
    %c0_114 = arith.constant 0 : index
    %c0_115 = arith.constant 0 : index
    %79 = vector.load %arg12[%c0_114, %c0_115] : memref<64x128xf32, #tpu.memory_space<vmem>>, vector<64x128xf32>
    tpu.vector_store %arg12[%c0_114, %c0_115], %78 {strides = array<i32>} : memref<64x128xf32, #tpu.memory_space<vmem>>, vector<64x128xf32>,
    %c0_116 = arith.constant 0 : index
    %c0_117 = arith.constant 0 : index
    %80 = tpu.strided_load %arg12[%c0_116, %c0_117] {strides = array<i32: 16, 1>} : memref<64x128xf32, #tpu.memory_space<vmem>>, vector<4x128xf32>
    %c0_118 = arith.constant 0 : index
    %c0_119 = arith.constant 0 : index
    %81 = vector.load %arg13[%c0_118, %c0_119] : memref<4x2048xf32, #tpu.memory_space<vmem>>, vector<4x128xf32>
    tpu.vector_store %arg13[%c0_118, %c0_119], %80 {strides = array<i32>} : memref<4x2048xf32, #tpu.memory_space<vmem>>, vector<4x128xf32>,
    %c1_120 = arith.constant 1 : index
    %c0_121 = arith.constant 0 : index
    %82 = tpu.strided_load %arg12[%c1_120, %c0_121] {strides = array<i32: 16, 1>} : memref<64x128xf32, #tpu.memory_space<vmem>>, vector<4x128xf32>
    %c0_122 = arith.constant 0 : index
    %c128_123 = arith.constant 128 : index
    %83 = vector.load %arg13[%c0_122, %c128_123] : memref<4x2048xf32, #tpu.memory_space<vmem>>, vector<4x128xf32>
    tpu.vector_store %arg13[%c0_122, %c128_123], %82 {strides = array<i32>} : memref<4x2048xf32, #tpu.memory_space<vmem>>, vector<4x128xf32>,
    %c2_124 = arith.constant 2 : index
    %c0_125 = arith.constant 0 : index
    %84 = tpu.strided_load %arg12[%c2_124, %c0_125] {strides = array<i32: 16, 1>} : memref<64x128xf32, #tpu.memory_space<vmem>>, vector<4x128xf32>
    %c0_126 = arith.constant 0 : index
    %c256_127 = arith.constant 256 : index
    %85 = vector.load %arg13[%c0_126, %c256_127] : memref<4x2048xf32, #tpu.memory_space<vmem>>, vector<4x128xf32>
    tpu.vector_store %arg13[%c0_126, %c256_127], %84 {strides = array<i32>} : memref<4x2048xf32, #tpu.memory_space<vmem>>, vector<4x128xf32>,
    %c3_128 = arith.constant 3 : index
    %c0_129 = arith.constant 0 : index
    %86 = tpu.strided_load %arg12[%c3_128, %c0_129] {strides = array<i32: 16, 1>} : memref<64x128xf32, #tpu.memory_space<vmem>>, vector<4x128xf32>
    %c0_130 = arith.constant 0 : index
    %c384 = arith.constant 384 : index
    %87 = vector.load %arg13[%c0_130, %c384] : memref<4x2048xf32, #tpu.memory_space<vmem>>, vector<4x128xf32>
    tpu.vector_store %arg13[%c0_130, %c384], %86 {strides = array<i32>} : memref<4x2048xf32, #tpu.memory_space<vmem>>, vector<4x128xf32>,
    %c4 = arith.constant 4 : index
    %c0_131 = arith.constant 0 : index
    %88 = tpu.strided_load %arg12[%c4, %c0_131] {strides = array<i32: 16, 1>} : memref<64x128xf32, #tpu.memory_space<vmem>>, vector<4x128xf32>
    %c0_132 = arith.constant 0 : index
    %c512 = arith.constant 512 : index
    %89 = vector.load %arg13[%c0_132, %c512] : memref<4x2048xf32, #tpu.memory_space<vmem>>, vector<4x128xf32>
    tpu.vector_store %arg13[%c0_132, %c512], %88 {strides = array<i32>} : memref<4x2048xf32, #tpu.memory_space<vmem>>, vector<4x128xf32>,
    %c5 = arith.constant 5 : index
    %c0_133 = arith.constant 0 : index
    %90 = tpu.strided_load %arg12[%c5, %c0_133] {strides = array<i32: 16, 1>} : memref<64x128xf32, #tpu.memory_space<vmem>>, vector<4x128xf32>
    %c0_134 = arith.constant 0 : index
    %c640 = arith.constant 640 : index
    %91 = vector.load %arg13[%c0_134, %c640] : memref<4x2048xf32, #tpu.memory_space<vmem>>, vector<4x128xf32>
    tpu.vector_store %arg13[%c0_134, %c640], %90 {strides = array<i32>} : memref<4x2048xf32, #tpu.memory_space<vmem>>, vector<4x128xf32>,
    %c6 = arith.constant 6 : index
    %c0_135 = arith.constant 0 : index
    %92 = tpu.strided_load %arg12[%c6, %c0_135] {strides = array<i32: 16, 1>} : memref<64x128xf32, #tpu.memory_space<vmem>>, vector<4x128xf32>
    %c0_136 = arith.constant 0 : index
    %c768 = arith.constant 768 : index
    %93 = vector.load %arg13[%c0_136, %c768] : memref<4x2048xf32, #tpu.memory_space<vmem>>, vector<4x128xf32>
    tpu.vector_store %arg13[%c0_136, %c768], %92 {strides = array<i32>} : memref<4x2048xf32, #tpu.memory_space<vmem>>, vector<4x128xf32>,
    %c7_137 = arith.constant 7 : index
    %c0_138 = arith.constant 0 : index
    %94 = tpu.strided_load %arg12[%c7_137, %c0_138] {strides = array<i32: 16, 1>} : memref<64x128xf32, #tpu.memory_space<vmem>>, vector<4x128xf32>
    %c0_139 = arith.constant 0 : index
    %c896 = arith.constant 896 : index
    %95 = vector.load %arg13[%c0_139, %c896] : memref<4x2048xf32, #tpu.memory_space<vmem>>, vector<4x128xf32>
    tpu.vector_store %arg13[%c0_139, %c896], %94 {strides = array<i32>} : memref<4x2048xf32, #tpu.memory_space<vmem>>, vector<4x128xf32>,
    %c8_140 = arith.constant 8 : index
    %c0_141 = arith.constant 0 : index
    %96 = tpu.strided_load %arg12[%c8_140, %c0_141] {strides = array<i32: 16, 1>} : memref<64x128xf32, #tpu.memory_space<vmem>>, vector<4x128xf32>
    %c0_142 = arith.constant 0 : index
    %c1024 = arith.constant 1024 : index
    %97 = vector.load %arg13[%c0_142, %c1024] : memref<4x2048xf32, #tpu.memory_space<vmem>>, vector<4x128xf32>
    tpu.vector_store %arg13[%c0_142, %c1024], %96 {strides = array<i32>} : memref<4x2048xf32, #tpu.memory_space<vmem>>, vector<4x128xf32>,
    %c9_143 = arith.constant 9 : index
    %c0_144 = arith.constant 0 : index
    %98 = tpu.strided_load %arg12[%c9_143, %c0_144] {strides = array<i32: 16, 1>} : memref<64x128xf32, #tpu.memory_space<vmem>>, vector<4x128xf32>
    %c0_145 = arith.constant 0 : index
    %c1152 = arith.constant 1152 : index
    %99 = vector.load %arg13[%c0_145, %c1152] : memref<4x2048xf32, #tpu.memory_space<vmem>>, vector<4x128xf32>
    tpu.vector_store %arg13[%c0_145, %c1152], %98 {strides = array<i32>} : memref<4x2048xf32, #tpu.memory_space<vmem>>, vector<4x128xf32>,
    %c10 = arith.constant 10 : index
    %c0_146 = arith.constant 0 : index
    %100 = tpu.strided_load %arg12[%c10, %c0_146] {strides = array<i32: 16, 1>} : memref<64x128xf32, #tpu.memory_space<vmem>>, vector<4x128xf32>
    %c0_147 = arith.constant 0 : index
    %c1280 = arith.constant 1280 : index
    %101 = vector.load %arg13[%c0_147, %c1280] : memref<4x2048xf32, #tpu.memory_space<vmem>>, vector<4x128xf32>
    tpu.vector_store %arg13[%c0_147, %c1280], %100 {strides = array<i32>} : memref<4x2048xf32, #tpu.memory_space<vmem>>, vector<4x128xf32>,
    %c11 = arith.constant 11 : index
    %c0_148 = arith.constant 0 : index
    %102 = tpu.strided_load %arg12[%c11, %c0_148] {strides = array<i32: 16, 1>} : memref<64x128xf32, #tpu.memory_space<vmem>>, vector<4x128xf32>
    %c0_149 = arith.constant 0 : index
    %c1408 = arith.constant 1408 : index
    %103 = vector.load %arg13[%c0_149, %c1408] : memref<4x2048xf32, #tpu.memory_space<vmem>>, vector<4x128xf32>
    tpu.vector_store %arg13[%c0_149, %c1408], %102 {strides = array<i32>} : memref<4x2048xf32, #tpu.memory_space<vmem>>, vector<4x128xf32>,
    %c12 = arith.constant 12 : index
    %c0_150 = arith.constant 0 : index
    %104 = tpu.strided_load %arg12[%c12, %c0_150] {strides = array<i32: 16, 1>} : memref<64x128xf32, #tpu.memory_space<vmem>>, vector<4x128xf32>
    %c0_151 = arith.constant 0 : index
    %c1536 = arith.constant 1536 : index
    %105 = vector.load %arg13[%c0_151, %c1536] : memref<4x2048xf32, #tpu.memory_space<vmem>>, vector<4x128xf32>
    tpu.vector_store %arg13[%c0_151, %c1536], %104 {strides = array<i32>} : memref<4x2048xf32, #tpu.memory_space<vmem>>, vector<4x128xf32>,
    %c13 = arith.constant 13 : index
    %c0_152 = arith.constant 0 : index
    %106 = tpu.strided_load %arg12[%c13, %c0_152] {strides = array<i32: 16, 1>} : memref<64x128xf32, #tpu.memory_space<vmem>>, vector<4x128xf32>
    %c0_153 = arith.constant 0 : index
    %c1664 = arith.constant 1664 : index
    %107 = vector.load %arg13[%c0_153, %c1664] : memref<4x2048xf32, #tpu.memory_space<vmem>>, vector<4x128xf32>
    tpu.vector_store %arg13[%c0_153, %c1664], %106 {strides = array<i32>} : memref<4x2048xf32, #tpu.memory_space<vmem>>, vector<4x128xf32>,
    %c14 = arith.constant 14 : index
    %c0_154 = arith.constant 0 : index
    %108 = tpu.strided_load %arg12[%c14, %c0_154] {strides = array<i32: 16, 1>} : memref<64x128xf32, #tpu.memory_space<vmem>>, vector<4x128xf32>
    %c0_155 = arith.constant 0 : index
    %c1792 = arith.constant 1792 : index
    %109 = vector.load %arg13[%c0_155, %c1792] : memref<4x2048xf32, #tpu.memory_space<vmem>>, vector<4x128xf32>
    tpu.vector_store %arg13[%c0_155, %c1792], %108 {strides = array<i32>} : memref<4x2048xf32, #tpu.memory_space<vmem>>, vector<4x128xf32>,
    %c15 = arith.constant 15 : index
    %c0_156 = arith.constant 0 : index
    %110 = tpu.strided_load %arg12[%c15, %c0_156] {strides = array<i32: 16, 1>} : memref<64x128xf32, #tpu.memory_space<vmem>>, vector<4x128xf32>
    %c0_157 = arith.constant 0 : index
    %c1920 = arith.constant 1920 : index
    %111 = vector.load %arg13[%c0_157, %c1920] : memref<4x2048xf32, #tpu.memory_space<vmem>>, vector<4x128xf32>
    tpu.vector_store %arg13[%c0_157, %c1920], %110 {strides = array<i32>} : memref<4x2048xf32, #tpu.memory_space<vmem>>, vector<4x128xf32>,
    %c0_158 = arith.constant 0 : index
    %c0_159 = arith.constant 0 : index
    %112 = vector.load %arg13[%c0_158, %c0_159] : memref<4x2048xf32, #tpu.memory_space<vmem>>, vector<4x2048xf32>
    %c0_160 = arith.constant 0 : index
    %c0_161 = arith.constant 0 : index
    %113 = vector.load %arg6[%c0_160, %c0_161] : memref<2048x128xf32, #tpu.memory_space<vmem>>, vector<2048x128xf32>
    %cst_162 = arith.constant dense<0.000000e+00> : vector<4x128xf32>
    %114 = tpu.matmul %112, %113, %cst_162 {dimension_numbers = #tpu.dot_dimension_numbers<[1], [0], [0], [1], [0, 0, 1, 1], [], []>} : vector<4x2048xf32>, vector<2048x128xf32>, vector<4x128xf32> -> vector<4x128xf32>
    %c0_163 = arith.constant 0 : index
    %c0_164 = arith.constant 0 : index
    %115 = vector.load %arg7[%c0_163, %c0_164] : memref<1x128xf32, #tpu.memory_space<vmem>>, vector<1x128xf32>
    %116 = vector.broadcast %115 : vector<1x128xf32> to vector<4x128xf32>
    %117 = arith.addf %114, %116 : vector<4x128xf32>
    %118 = tpu.iota {dimensions = array<i32: 1>} : vector<4x128xi32>
    %c10_i32 = arith.constant 10 : i32
    %119 = vector.broadcast %c10_i32 : i32 to vector<4x128xi32>
    %120 = arith.cmpi slt, %118, %119 : vector<4x128xi32>
    %cst_165 = arith.constant -1.000000e+30 : f32
    %121 = vector.broadcast %cst_165 : f32 to vector<4x128xf32>
    %122 = arith.select %120, %117, %121 : vector<4x128xi1>, vector<4x128xf32>
    %cst_166 = arith.constant dense<0xFF800000> : vector<4xf32>
    %123 = vector.multi_reduction <maximumf>, %122, %cst_166 [1] : vector<4x128xf32> to vector<4xf32>
    %124 = vector.shape_cast %123 : vector<4xf32> to vector<4x1xf32>
    %125 = vector.broadcast %124 : vector<4x1xf32> to vector<4x128xf32>
    %126 = arith.subf %122, %125 : vector<4x128xf32>
    %127 = math.exp %126 : vector<4x128xf32>
    %cst_167 = arith.constant dense<0.000000e+00> : vector<4xf32>
    %128 = vector.multi_reduction <add>, %127, %cst_167 [1] : vector<4x128xf32> to vector<4xf32>
    %129 = vector.shape_cast %128 : vector<4xf32> to vector<4x1xf32>
    %130 = vector.broadcast %129 : vector<4x1xf32> to vector<4x128xf32>
    %131 = arith.divf %127, %130 : vector<4x128xf32>
    %c0_168 = arith.constant 0 : index
    %c0_169 = arith.constant 0 : index
    %c0_170 = arith.constant 0 : index
    %132 = vector.load %arg8[%c0_168, %c0_169, %c0_170] : memref<1x4x128xf32, #tpu.memory_space<vmem>>, vector<1x4x128xf32>
    %133 = vector.shape_cast %132 : vector<1x4x128xf32> to vector<4x128xf32>
    %134 = vector.shape_cast %131 : vector<4x128xf32> to vector<1x4x128xf32>
    tpu.vector_store %arg8[%c0_168, %c0_169, %c0_170], %134 {strides = array<i32>} : memref<1x4x128xf32, #tpu.memory_space<vmem>>, vector<1x4x128xf32>,
    return
  }
  func.func @transform_0(%arg0: i32) -> (i32, i32, i32) {
    %c0_i32 = arith.constant 0 : i32
    %c0_i32_0 = arith.constant 0 : i32
    %c0_i32_1 = arith.constant 0 : i32
    return %arg0, %c0_i32, %c0_i32_0 : i32, i32, i32
  }
  func.func @transform_1(%arg0: i32) -> (i32, i32) {
    %c0_i32 = arith.constant 0 : i32
    %c0_i32_0 = arith.constant 0 : i32
    %c0_i32_1 = arith.constant 0 : i32
    return %c0_i32, %c0_i32_0 : i32, i32
  }
  func.func @transform_2(%arg0: i32) -> (i32, i32) {
    %c0_i32 = arith.constant 0 : i32
    %c0_i32_0 = arith.constant 0 : i32
    %c0_i32_1 = arith.constant 0 : i32
    return %c0_i32, %c0_i32_0 : i32, i32
  }
  func.func @transform_3(%arg0: i32) -> (i32, i32) {
    %c0_i32 = arith.constant 0 : i32
    %c0_i32_0 = arith.constant 0 : i32
    %c0_i32_1 = arith.constant 0 : i32
    return %c0_i32, %c0_i32_0 : i32, i32
  }
  func.func @transform_4(%arg0: i32) -> (i32, i32) {
    %c0_i32 = arith.constant 0 : i32
    %c0_i32_0 = arith.constant 0 : i32
    %c0_i32_1 = arith.constant 0 : i32
    return %c0_i32, %c0_i32_0 : i32, i32
  }
  func.func @transform_5(%arg0: i32) -> (i32, i32) {
    %c0_i32 = arith.constant 0 : i32
    %c0_i32_0 = arith.constant 0 : i32
    %c0_i32_1 = arith.constant 0 : i32
    return %c0_i32, %c0_i32_0 : i32, i32
  }
  func.func @transform_6(%arg0: i32) -> (i32, i32) {
    %c0_i32 = arith.constant 0 : i32
    %c0_i32_0 = arith.constant 0 : i32
    %c0_i32_1 = arith.constant 0 : i32
    return %c0_i32, %c0_i32_0 : i32, i32
  }
  func.func @transform_7(%arg0: i32) -> (i32, i32, i32) {
    %c0_i32 = arith.constant 0 : i32
    %c0_i32_0 = arith.constant 0 : i32
    %c0_i32_1 = arith.constant 0 : i32
    return %arg0, %c0_i32, %c0_i32_0 : i32, i32, i32
  }
}

</mosaic_0001>

<bundles_post_ra>
// kernel: _lambda_.1
= control target key start
LH: loop header
LB: loop body
LE: loop exit
PB: predicated region body
PF: predicated region fallthrough
CT: control target
= control target key end

     0   :  { %12 = vsyncpa [#allocation8], 0  ;;  %s2308_s0 = inlined_call_operand.vmem [shape: f32[8,16,64], index: 0, kind: input, shape index: {}]   ;;  %s2309_s1 = inlined_call_operand.vmem [shape: f32[192,128], index: 1, kind: input, shape index: {}]   ;;  %s2310_s2 = inlined_call_operand.vmem [shape: f32[1,128], index: 2, kind: input, shape index: {}]   ;;  %s2311_s3 = inlined_call_operand.vmem [shape: f32[384,128], index: 3, kind: input, shape index: {}]   ;;  %s2312_s4 = inlined_call_operand.vmem [shape: f32[1,128], index: 4, kind: input, shape index: {}]   ;;  %s2313_s5 = inlined_call_operand.hbm [shape: f32[2048,128], index: 5, kind: input, shape index: {}]   ;;  %s2314_s6 = inlined_call_operand.vmem [shape: f32[1,128], index: 6, kind: input, shape index: {}]   ;;  %s2315_s7 = inlined_call_operand.hbm [shape: f32[2,4,128], index: 7, kind: output, shape index: {}]  }
   0x1   :  { %13 = vsyncpa [#allocation9], 0 }
   0x2   :  { %15 = vsyncpa [#allocation9 + $0x1], 0  ;;  %s1883_s24 = smov 0   ;;  %s1885_s25 = smov 0  }
   0x3   :  { %s1887_s26 = smov 0   ;;  %s1889_s27 = smov 0  }
   0x4 LB: > { %s1904_s28 = sadd.s32 4294967295, %s1836_s27   ;;  %s1650_s29 = sadd.s32 4294967294, %s1836_s27   ;;  %s1836_s27 = sphi %s1889_s27, %s2321_s27   ;;  %s1832_s26 = sphi %s1887_s26, %s2320_s26   ;;  %s1828_s25 = sphi %s1885_s25, %s2319_s25   ;;  %s1824_s24 = sphi %s1883_s24, %s2318_s24  }
   0x5   : > { %s1908_s30 = sadd.s32 1, %s1836_s27   ;;  %s180_s8 = sadd.s32 1, %s1832_s26 }
   0x6   : > { %s177_s9 = ssub.s32 %s1836_s27, %s1908_s30  ;;  %p190_p0 = scmp.ne.s32.totalorder %s1832_s26, %s1828_s25 }
   0x7   : > { %p178_p1 = scmp.eq.s32.totalorder %s177_s9, 0  ;;  %p191_p2 = scmp.eq.s32.totalorder %s1904_s28, 1 }
   0x8   : > { %p196_p3 = scmp.ne.s32.totalorder %s1828_s25, %s1824_s24  ;;  %p197_p4 = scmp.eq.s32.totalorder %s1650_s29, 1 }
   0x9   : > { %s1919_s10 = scalar_select %p178_p1, %s1832_s26, %s180_s8  }
   0xa   : > { %p1921_p5 = por %p191_p2, %p190_p0  ;;  %p1925_p6 = por %p197_p4, %p196_p3 }
   0xb   : > { %p1651_p7 = scmp.ge.s32.totalorder %s1836_s27, 1  ;;  %p204_p8 = scmp.lt.s32.totalorder %s1836_s27, 3 }
   0xc   : > { %p1693_p9 = scmp.eq.s32.totalorder %s1904_s28, 0  ;;  %s227_s15 = sshll.u32 %s2313_s5, 4  ;;  %s228_s15 = int_to_ptr.hbm [resolvable:$true] %s227_s15 }
   0xd   : > { %p205_p10 = pnand %p1651_p7, %p204_p8  ;;  %s1838_s16 = smov [#allocation7]  }
   0xe   : > { %s229_s17 = sshll.u32 %s1838_s16, 4  ;;  %s1839_s18 = smov 128   ;;  %s230_s17 = int_to_ptr.vmem [resolvable:$true] %s229_s17 }
   0xf   : > { %p1685_p11 = pneg %p205_p10  ;;  %s1840_s19 = smov 8  }
  0x10   : > { %258 = sbr.rel (%p205_p10) target bundleno = 1012 (0x3f4), region = 48 }
  0x11   : > { %p1686_p12 = pnand %p1693_p9, %p1685_p11 }
  0x13   : > { %1688 = dma.hbm_to_vmem [thread:$0]  (!%p1686_p12), %s228_s15, 32768, %s230_s17, [#allocation8], %s1839_s18, %s1839_s18, %s1840_s19  }
  0x15   : > { %1815 = dma.done.wait (%p1693_p9), [#allocation8], 32768  }
  0x16   : > { %1817 = vsyncadd (%p1693_p9), [#allocation8], 4294934528  ;;  %s1942_s20 = sshll.u32 %s1904_s28, 2  ;;  %v1841_v0 = vmov 0.0   ;;  %vm303_vm0 = vcmask 523264   ;;  %s1842_s28 = smov 64  }
  0x17   : > { %p293_p13 = scmp.lt.s32.totalorder %s1942_s20, 7  ;;  %299 = vst [vmem:[#allocation2] sm:$0xff] %v1841_v0  ;;  %v425_v5 = vld [vmem:[%s2309_s1 + $0x78] sm:$0xff]  ;;  %v424_v6 = vld [vmem:[%s2309_s1 + $0x70] sm:$0xff]  ;;  %v423_v7 = vld [vmem:[%s2309_s1 + $0x68] sm:$0xff]  ;;  %vm314_vm1 = vcmask 1048064   ;;  %s1574_s14 = scalar_lea.hbm %s2315_s7, %s1942_s20 }
  0x18   : > { %300 = vst [vmem:[#allocation2 + $0x18] sm:$0xff] %v1841_v0  ;;  %462 = vmatpush.msra.mxu0 %v425_v5  ;;  %v422_v9 = vld [vmem:[%s2309_s1 + $0x60] sm:$0xff]  ;;  %v433_v10 = vld [vmem:[%s2309_s1 + $0xb8] sm:$0xff]  ;;  %v432_v11 = vld [vmem:[%s2309_s1 + $0xb0] sm:$0xff]  ;;  %vm1537_vm3 = vcmask 1043456   ;;  %s289_s29 = sand.u32 1, %s1828_s25  }
  0x19   : > { %s294_s21 = scalar_select %p293_p13, %s1942_s20, 7  ;;  %511 = vmatpush.msra.mxu1 %v433_v10  ;;  %v421_v13 = vld [vmem:[%s2309_s1 + $0x58] sm:$0xff]  ;;  %v420_v18 = vld [vmem:[%s2309_s1 + $0x50] sm:$0xff]  ;;  %v419_v19 = vld [vmem:[%s2309_s1 + $0x48] sm:$0xff] }
  0x1a   : > { %463 = vmatpush.msra.mxu0 %v424_v6  ;;  %v418_v22 = vld [vmem:[%s2309_s1 + $0x40] sm:$0xff]  ;;  %v417_v23 = vld [vmem:[%s2309_s1 + $0x38] sm:$0xff]  ;;  %v416_v26 = vld [vmem:[%s2309_s1 + $0x30] sm:$0xff]  ;;  %s1578_s17 = sshll.u32 %s1574_s14, 4  ;;  %s1564_s18 = scalar_lea.sflag [#allocation9], %s289_s29  ;;  %s1579_s17 = int_to_ptr.hbm [resolvable:$true] %s1578_s17 }
  0x1b   : > { %s1678_s22 = sshll.u32 %s294_s21, 4  ;;  %512 = vmatpush.msra.mxu1 %v432_v11  ;;  %v415_v28 = vld [vmem:[%s2309_s1 + $0x28] sm:$0xff]  ;;  %v414_v29 = vld [vmem:[%s2309_s1 + $0x20] sm:$0xff]  ;;  %v413_v31 = vld [vmem:[%s2309_s1 + $0x18] sm:$0xff]  ;;  %s1784_s19 = sshra.s32 %s1579_s17, 4  ;;  %s1785_s19 = int_to_ptr.hbm [resolvable:$true] %s1784_s19 }
  0x1c   : > { %s1949_s8 = scalar_lea.vmem %s2308_s0, %s1678_s22  ;;  %464 = vmatpush.msra.mxu0 %v423_v7  ;;  %v431_v30 = vld [vmem:[%s2309_s1 + $0xa8] sm:$0xff]  ;;  %v430_v32 = vld [vmem:[%s2309_s1 + $0xa0] sm:$0xff]  ;;  %v412_v33 = vld [vmem:[%s2309_s1 + $0x10] sm:$0xff]  ;;  %s1786_s21 = scalar_lea.hbm %s1785_s19, 4 }
  0x1d   : > { %v301_v1 = vld [vmem:[%s1949_s8] sm:$0xff]  ;;  %v1660_v2 = vld [vmem:[%s1949_s8 + $0x10] sm:$0xff]  ;;  %v302_v3 = vld [vmem:[%s1949_s8 + $0x8] sm:$0xff]  ;;  %513 = vmatpush.msra.mxu1 %v431_v30  ;;  %p1787_p0 = scmp.ne.s32.totalorder %s1785_s19, %s1786_s21  ;;  %p1791_p3 = scmp.lt.s32.totalorder %s1785_s19, %s2315_s7 }
  0x1e   : > { %308 = vrot.lane.b32.xlu0 %v301_v1, %s1842_s28  ;;  %304 = vst.msk [vmem:[#allocation2 + $0x8] sm:$0xff] %vm303_vm0, %v301_v1  ;;  %332 = vrot.lane.b32.xlu1 %v1660_v2, %s1842_s28  ;;  %v1959_v4 = vld [vmem:[%s1949_s8 + $0x20] sm:$0xff]  ;;  %v1661_v8 = vld [vmem:[%s1949_s8 + $0x18] sm:$0xff] }
  0x1f   : > { %305 = vst.msk [vmem:[#allocation2 + $0x10] sm:$0xff] %vm303_vm0, %v302_v3  ;;  %355 = vrot.lane.b32.xlu2 %v1959_v4, %s1842_s28  ;;  %v1663_v12 = vld [vmem:[%s1949_s8 + $0x28] sm:$0xff]  ;;  %465 = vmatpush.msra.mxu0 %v422_v9  ;;  %v2004_v20 = vld [vmem:[%s1949_s8 + $0x30] sm:$0xff]  ;;  %v2007_v21 = vld [vmem:[%s1949_s8 + $0x38] sm:$0xff]  ;;  %p1788_p1 = pnand %p1787_p0, %p1921_p5  ;;  %s1790_s8 = scalar_lea.hbm %s2315_s7, 8 }
  0x20   : > { %514 = vmatpush.msra.mxu1 %v430_v32  ;;  %v429_v34 = vld [vmem:[%s2309_s1 + $0x98] sm:$0xff]  ;;  %v411_v35 = vld [vmem:[%s2309_s1 + $0x8] sm:$0xff]  ;;  %v428_v36 = vld [vmem:[%s2309_s1 + $0x90] sm:$0xff]  ;;  %p1792_p4 = scmp.lt.s32.totalorder %s1790_s8, %s1786_s21 }
  0x21   : > { %466 = vmatpush.msra.mxu0 %v421_v13  ;;  %v410_v37 = vld [vmem:[%s2309_s1] sm:$0xff]  ;;  %v427_v38 = vld [vmem:[%s2309_s1 + $0x88] sm:$0xff]  ;;  %v654_v5 = vld [vmem:[%s2311_s3 + $0xf0] sm:$0xff]  ;;  %p1789_p2 = pneg %p1788_p1 }
  0x22   : > { %515 = vmatpush.msra.mxu1 %v429_v34  ;;  %v426_v39 = vld [vmem:[%s2309_s1 + $0x80] sm:$0xff]  ;;  %v639_v6 = vld [vmem:[%s2311_s3 + $0x78] sm:$0xff]  ;;  %v638_v9 = vld [vmem:[%s2311_s3 + $0x70] sm:$0xff]  ;;  %p1793_p7 = por %p1792_p4, %p1791_p3 }
  0x23   : > { %467 = vmatpush.msra.mxu0 %v420_v18  ;;  %676 = vmatpush.msra.mxu2 %v639_v6  ;;  %v637_v10 = vld [vmem:[%s2311_s3 + $0x68] sm:$0xff]  ;;  %v652_v11 = vld [vmem:[%s2311_s3 + $0xe0] sm:$0xff]  ;;  %v650_v18 = vld [vmem:[%s2311_s3 + $0xd0] sm:$0xff] }
  0x24   : > { %516 = vmatpush.msra.mxu1 %v428_v36  ;;  %v644_v30 = vld [vmem:[%s2311_s3 + $0xa0] sm:$0xff]  ;;  %v643_v34 = vld [vmem:[%s2311_s3 + $0x98] sm:$0xff]  ;;  %v630_v36 = vld [vmem:[%s2311_s3 + $0x30] sm:$0xff]  ;;  %p1794_p8 = pnand %p1793_p7, %p1789_p2 }
  0x25   : > { %v1991_v17 = vld [vmem:[#allocation2 + $0x7] sm:$0xff]  ;;  %468 = vmatpush.msra.mxu0 %v419_v19  ;;  %677 = vmatpush.msra.mxu2 %v638_v9 }
  0x26   : > { %310 = vrot.lane.b32.xlu0 %v302_v3, %s1842_s28  ;;  %v1987_v14 = vld [vmem:[#allocation2 + $0xf] sm:$0xff]  ;;  %334 = vrot.lane.b32.xlu1 %v1661_v8, %s1842_s28  ;;  %v669_v19 = vld [vmem:[%s2311_s3 + $0x168] sm:$0xff] }
  0x27   : > { %v321_v15 = vld [vmem:[#allocation2 + $0x9] sm:$0xff]  ;;  %v322_v16 = vld [vmem:[#allocation2 + $0x11] sm:$0xff]  ;;  %357 = vrot.lane.b32.xlu2 %v1663_v12, %s1842_s28  ;;  %469 = vmatpush.msra.mxu0 %v418_v22 }
  0x28   : > { %323 = vst.msk [vmem:[#allocation3 + $0x8] sm:$0xff] %vm303_vm0, %v321_v15  ;;  %517 = vmatpush.msra.mxu1 %v427_v38  ;;  %v651_v15 = vld [vmem:[%s2311_s3 + $0xd8] sm:$0xff]  ;;  %678 = vmatpush.msra.mxu2 %v637_v10  ;;  %v668_v22 = vld [vmem:[%s2311_s3 + $0x160] sm:$0xff]  ;;  %v666_v38 = vld [vmem:[%s2311_s3 + $0x150] sm:$0xff] }
  0x29   : > { %328 = vst.msk [vmem:[#allocation2 + $0x8] sm:$0xff] %vm303_vm0, %v1660_v2  ;;  %470 = vmatpush.msra.mxu0 %v417_v23  ;;  %v633_v23 = vld [vmem:[%s2311_s3 + $0x48] sm:$0xff] }
  0x2a   : > { %329 = vst.msk [vmem:[#allocation2 + $0x10] sm:$0xff] %vm303_vm0, %v1661_v8  ;;  %518 = vmatpush.msra.mxu1 %v426_v39  ;;  %v653_v8 = vld [vmem:[%s2311_s3 + $0xe8] sm:$0xff] }
  0x2b   : > { %324 = vst.msk [vmem:[#allocation3 + $0x18] sm:$0xff] %vm303_vm0, %v322_v16  ;;  %471 = vmatpush.msra.mxu0 %v416_v26  ;;  %v670_v16 = vld [vmem:[%s2311_s3 + $0x170] sm:$0xff]  ;;  %v632_v26 = vld [vmem:[%s2311_s3 + $0x40] sm:$0xff]  ;;  %v629_v39 = vld [vmem:[%s2311_s3 + $0x28] sm:$0xff] }
  0x2d   : > { %472 = vmatpush.msra.mxu0 %v415_v28  ;;  %v646_v28 = vld [vmem:[%s2311_s3 + $0xb0] sm:$0xff] }
  0x2e   : > { %378 = vrot.lane.b32.xlu0 %v2004_v20, %s1842_s28  ;;  %380 = vrot.lane.b32.xlu1 %v2007_v21, %s1842_s28  ;;  %s1656_s28 = sshll.u32 %s289_s29, 2 }
  0x2f   : > { %473 = vmatpush.msra.mxu0 %v414_v29  ;;  %v395_v40 = vld [vmem:[#allocation3 + $0x8] sm:$0xff]  ;;  %v645_v29 = vld [vmem:[%s2311_s3 + $0xa8] sm:$0xff]  ;;  %s291_s15 = scalar_lea.vmem [#allocation10], %s1656_s28 }
  0x30   : > { %v340_v41 = vld [vmem:[#allocation2 + $0x7] sm:$0xff]  ;;  %1666 = vmatmul.msk.f32.vlgmr.msra.gmra.mxu1 %vm303_vm0, %v395_v40  ;;  %s1576_s16 = sshll.u32 %s291_s15, 4  ;;  %s1577_s16 = int_to_ptr.vmem [resolvable:$true] %s1576_s16 }
  0x31   : > { %v344_v24 = vld [vmem:[#allocation2 + $0x9] sm:$0xff]  ;;  %v345_v25 = vld [vmem:[#allocation2 + $0x11] sm:$0xff]  ;;  %474 = vmatpush.msra.mxu0 %v413_v31  ;;  %v641_v40 = vld [vmem:[%s2311_s3 + $0x88] sm:$0xff] }
  0x32   : > { %346 = vst.msk [vmem:[#allocation3 + $0x28] sm:$0xff] %vm303_vm0, %v344_v24  ;;  %v2023_v27 = vld [vmem:[#allocation2 + $0xf] sm:$0xff]  ;;  %v397_v42 = vld [vmem:[#allocation3 + $0x18] sm:$0xff] }
  0x33   : > { %347 = vst.msk [vmem:[#allocation3 + $0x38] sm:$0xff] %vm303_vm0, %v345_v25  ;;  %475 = vmatpush.msra.mxu0 %v412_v33  ;;  %v648_v24 = vld [vmem:[%s2311_s3 + $0xc0] sm:$0xff]  ;;  %v631_v33 = vld [vmem:[%s2311_s3 + $0x38] sm:$0xff] }
  0x34   : > { %352 = vst.msk [vmem:[#allocation2 + $0x10] sm:$0xff] %vm303_vm0, %v1663_v12  ;;  %v671_v12 = vld [vmem:[%s2311_s3 + $0x178] sm:$0xff] }
  0x35   : > { %476 = vmatpush.msra.mxu0 %v411_v35  ;;  %351 = vst.msk [vmem:[#allocation2 + $0x8] sm:$0xff] %vm303_vm0, %v1959_v4  ;;  %v655_v4 = vld [vmem:[%s2311_s3 + $0xf8] sm:$0xff]  ;;  %758 = vmatpush.msrb.mxu1 %v671_v12 }
  0x36   : > { %717 = vmatpush.msra.mxu3 %v655_v4  ;;  %v667_v35 = vld [vmem:[%s2311_s3 + $0x158] sm:$0xff] }
  0x37   : > { %477 = vmatpush.msra.mxu0 %v410_v37  ;;  %759 = vmatpush.msrb.mxu1 %v670_v16  ;;  %v642_v37 = vld [vmem:[%s2311_s3 + $0x90] sm:$0xff] }
  0x38   : > { %1667 = vmatmul.msk.f32.gmra.mxu1 %vm303_vm0, %v397_v42  ;;  %718 = vmatpush.msra.mxu3 %v654_v5  ;;  %v628_v42 = vld [vmem:[%s2311_s3 + $0x20] sm:$0xff] }
  0x39   : > { %v399_v43 = vld [vmem:[#allocation3 + $0x28] sm:$0xff]  ;;  %760 = vmatpush.msrb.mxu1 %v669_v19 }
  0x3a   : > { %v401_v48 = vld [vmem:[#allocation3 + $0x38] sm:$0xff]  ;;  %719 = vmatpush.msra.mxu3 %v653_v8 }
  0x3b   : > { %v368_v55 = vld [vmem:[#allocation2 + $0x11] sm:$0xff]  ;;  %761 = vmatpush.msrb.mxu1 %v668_v22 }
  0x3c   : > { %v363_v45 = vld [vmem:[#allocation2 + $0x7] sm:$0xff]  ;;  %v364_v50 = vld [vmem:[#allocation2 + $0xf] sm:$0xff]  ;;  %370 = vst.msk [vmem:[#allocation3 + $0x58] sm:$0xff] %vm303_vm0, %v368_v55  ;;  %720 = vmatpush.msra.mxu3 %v652_v11 }
  0x3d   : > { %v367_v51 = vld [vmem:[#allocation2 + $0x9] sm:$0xff]  ;;  %762 = vmatpush.msrb.mxu1 %v667_v35 }
  0x3e   : > { %369 = vst.msk [vmem:[#allocation3 + $0x48] sm:$0xff] %vm303_vm0, %v367_v51  ;;  %721 = vmatpush.msra.mxu3 %v651_v15  ;;  %v624_v51 = vld [vmem:[%s2311_s3] sm:$0xff] }
  0x3f   : > { %374 = vst.msk [vmem:[#allocation2 + $0x8] sm:$0xff] %vm303_vm0, %v2004_v20  ;;  %v634_v20 = vld [vmem:[%s2311_s3 + $0x50] sm:$0xff]  ;;  %763 = vmatpush.msrb.mxu1 %v666_v38 }
  0x40   : > { %1668 = vmatmul.msk.f32.gmra.mxu1 %vm303_vm0, %v399_v43  ;;  %375 = vst.msk [vmem:[#allocation2 + $0x10] sm:$0xff] %vm303_vm0, %v2007_v21  ;;  %v649_v21 = vld [vmem:[%s2311_s3 + $0xc8] sm:$0xff]  ;;  %722 = vmatpush.msra.mxu3 %v650_v18  ;;  %v640_v43 = vld [vmem:[%s2311_s3 + $0x80] sm:$0xff] }
  0x42   : > { %723 = vmatpush.msra.mxu3 %v649_v21 }
  0x43   : > { %v405_v61 = vld [vmem:[#allocation3 + $0x58] sm:$0xff] }
  0x44   : > { %724 = vmatpush.msra.mxu3 %v648_v24 }
  0x45   : > { %v403_v56 = vld [vmem:[#allocation3 + $0x48] sm:$0xff] }
  0x46   : > { %v386_v57 = vld [vmem:[#allocation2 + $0x7] sm:$0xff] }
  0x47   : > { %v387_v62 = vld [vmem:[#allocation2 + $0xf] sm:$0xff] }
  0x48   : > { %1669 = vmatmul.msk.f32.gmra.mxu1 %vm303_vm0, %v401_v48  ;;  %v390_v63 = vld [vmem:[#allocation2 + $0x9] sm:$0xff]  ;;  %v391_v1 = vld [vmem:[#allocation2 + $0x11] sm:$0xff] }
  0x49   : > { %392 = vst.msk [vmem:[#allocation3 + $0x68] sm:$0xff] %vm303_vm0, %v390_v63  ;;  %v662_v48 = vld [vmem:[%s2311_s3 + $0x130] sm:$0xff] }
  0x4a   : > { %393 = vst.msk [vmem:[#allocation3 + $0x78] sm:$0xff] %vm303_vm0, %v391_v1 }
  0x50   : > { %1670 = vmatmul.msk.f32.gmra.mxu1 %vm303_vm0, %v403_v56  ;;  %v407_v2 = vld [vmem:[#allocation3 + $0x68] sm:$0xff]  ;;  %v657_v56 = vld [vmem:[%s2311_s3 + $0x108] sm:$0xff] }
  0x51   : > { %v409_v7 = vld [vmem:[#allocation3 + $0x78] sm:$0xff] }
  0x58   : > { %1671 = vmatmul.msk.f32.gmra.mxu1 %vm303_vm0, %v405_v61 }
  0x60   : > { %1672 = vmatmul.msk.f32.gmra.mxu1 %vm303_vm0, %v407_v2 }
  0x68   : > { %1673 = vmatmul.msk.f32.gmra.mxu1 %vm303_vm0, %v409_v7 }
  0x79   : > { %v356_v44 = vpop.permute.xlu2 %355 }
  0x7a   : > { %361 = vst.msk [vmem:[#allocation3 + $0x40] sm:$0xff] %vm314_vm1, %v356_v44  ;;  %v664_v44 = vld [vmem:[%s2311_s3 + $0x140] sm:$0xff] }
  0x7b   : > { %365 = vst.msk [vmem:[#allocation3 + $0x40] sm:$0xff] %vm303_vm0, %v363_v45  ;;  %v627_v45 = vld [vmem:[%s2311_s3 + $0x18] sm:$0xff] }
  0x81   : > { %v358_v49 = vpop.permute.xlu2 %357 }
  0x82   : > { %362 = vst.msk [vmem:[#allocation3 + $0x50] sm:$0xff] %vm314_vm1, %v358_v49  ;;  %v402_v13 = vld [vmem:[#allocation3 + $0x40] sm:$0xff] }
  0x83   : > { %366 = vst.msk [vmem:[#allocation3 + $0x50] sm:$0xff] %vm303_vm0, %v364_v50  ;;  %v625_v49 = vld [vmem:[%s2311_s3 + $0x8] sm:$0xff] }
  0x84   : > { %v661_v50 = vld [vmem:[%s2311_s3 + $0x128] sm:$0xff] }
  0x8a   : > { %v404_v25 = vld [vmem:[#allocation3 + $0x50] sm:$0xff] }
  0x90   : > { %v309_v46 = vpop.permute.xlu0 %308  ;;  %v333_v47 = vpop.permute.xlu1 %332 }
  0x91   : > { %315 = vst.msk [vmem:[#allocation3] sm:$0xff] %vm314_vm1, %v309_v46  ;;  %v663_v46 = vld [vmem:[%s2311_s3 + $0x138] sm:$0xff] }
  0x92   : > { %319 = vst.msk [vmem:[#allocation3] sm:$0xff] %vm303_vm0, %v1991_v17  ;;  %v635_v17 = vld [vmem:[%s2311_s3 + $0x58] sm:$0xff] }
  0x93   : > { %338 = vst.msk [vmem:[#allocation3 + $0x20] sm:$0xff] %vm314_vm1, %v333_v47  ;;  %v626_v47 = vld [vmem:[%s2311_s3 + $0x10] sm:$0xff] }
  0x94   : > { %342 = vst.msk [vmem:[#allocation3 + $0x20] sm:$0xff] %vm303_vm0, %v340_v41  ;;  %v665_v41 = vld [vmem:[%s2311_s3 + $0x148] sm:$0xff] }
  0x95   : > { %764 = vmatpush.msrb.mxu1 %v665_v41 }
  0x97   : > { %765 = vmatpush.msrb.mxu1 %v664_v44 }
  0x98   : > { %v311_v52 = vpop.permute.xlu0 %310  ;;  %v335_v53 = vpop.permute.xlu1 %334 }
  0x99   : > { %316 = vst.msk [vmem:[#allocation3 + $0x10] sm:$0xff] %vm314_vm1, %v311_v52  ;;  %v394_v54 = vld [vmem:[#allocation3] sm:$0xff]  ;;  %766 = vmatpush.msrb.mxu1 %v663_v46  ;;  %v660_v52 = vld [vmem:[%s2311_s3 + $0x120] sm:$0xff] }
  0x9a   : > { %320 = vst.msk [vmem:[#allocation3 + $0x10] sm:$0xff] %vm303_vm0, %v1987_v14  ;;  %478 = vmatmul.f32.vlgmr.msra.gmra.mxu0 %v394_v54  ;;  %v636_v14 = vld [vmem:[%s2311_s3 + $0x60] sm:$0xff]  ;;  %v658_v54 = vld [vmem:[%s2311_s3 + $0x110] sm:$0xff] }
  0x9b   : > { %339 = vst.msk [vmem:[#allocation3 + $0x30] sm:$0xff] %vm314_vm1, %v335_v53  ;;  %v398_v0 = vld [vmem:[#allocation3 + $0x20] sm:$0xff]  ;;  %679 = vmatpush.msra.mxu2 %v636_v14  ;;  %767 = vmatpush.msrb.mxu1 %v662_v48  ;;  %v659_v53 = vld [vmem:[%s2311_s3 + $0x118] sm:$0xff] }
  0x9c   : > { %343 = vst.msk [vmem:[#allocation3 + $0x30] sm:$0xff] %vm303_vm0, %v2023_v27  ;;  %v647_v27 = vld [vmem:[%s2311_s3 + $0xb8] sm:$0xff] }
  0x9d   : > { %680 = vmatpush.msra.mxu2 %v635_v17  ;;  %725 = vmatpush.msra.mxu3 %v647_v27 }
  0x9e   : > { %768 = vmatpush.msrb.mxu1 %v661_v50  ;;  %v917_v50 = vld [vmem:[#allocation7 + $0x78] sm:$0xff] }
  0x9f   : > { %681 = vmatpush.msra.mxu2 %v634_v20  ;;  %726 = vmatpush.msra.mxu3 %v646_v28 }
  0xa0   : > { %v379_v58 = vpop.permute.xlu0 %378  ;;  %v381_v60 = vpop.permute.xlu1 %380  ;;  %769 = vmatpush.msrb.mxu1 %v660_v52  ;;  %v949_v52 = vld [vmem:[#allocation7 + $0x178] sm:$0xff]  ;;  %1213 = vmatpush.msrb.mxu0 %v917_v50 }
  0xa1   : > { %v396_v59 = vld [vmem:[#allocation3 + $0x10] sm:$0xff]  ;;  %384 = vst.msk [vmem:[#allocation3 + $0x60] sm:$0xff] %vm314_vm1, %v379_v58  ;;  %682 = vmatpush.msra.mxu2 %v633_v23  ;;  %727 = vmatpush.msra.mxu3 %v645_v29 }
  0xa2   : > { %481 = vmatmul.f32.gmra.mxu0 %v396_v59  ;;  %388 = vst.msk [vmem:[#allocation3 + $0x60] sm:$0xff] %vm303_vm0, %v386_v57  ;;  %770 = vmatpush.msrb.mxu1 %v659_v53  ;;  %v656_v57 = vld [vmem:[%s2311_s3 + $0x100] sm:$0xff] }
  0xa3   : > { %385 = vst.msk [vmem:[#allocation3 + $0x70] sm:$0xff] %vm314_vm1, %v381_v60  ;;  %v400_v3 = vld [vmem:[#allocation3 + $0x30] sm:$0xff]  ;;  %683 = vmatpush.msra.mxu2 %v632_v26  ;;  %728 = vmatpush.msra.mxu3 %v644_v30  ;;  %v2247_v59 = vld [vmem:[%s2310_s2] ss:$0 sm:$0xff] }
  0xa4   : > { %389 = vst.msk [vmem:[#allocation3 + $0x70] sm:$0xff] %vm303_vm0, %v387_v62  ;;  %771 = vmatpush.msrb.mxu1 %v658_v54  ;;  %v1013_v54 = vld [vmem:[#allocation7 + $0x378] sm:$0xff] }
  0xa5   : > { %684 = vmatpush.msra.mxu2 %v631_v33  ;;  %729 = vmatpush.msra.mxu3 %v643_v34 }
  0xa6   : > { %772 = vmatpush.msrb.mxu1 %v657_v56  ;;  %v932_v56 = vld [vmem:[#allocation7 + $0xf0] sm:$0xff] }
  0xa7   : > { %685 = vmatpush.msra.mxu2 %v630_v36  ;;  %730 = vmatpush.msra.mxu3 %v642_v37 }
  0xa8   : > { %773 = vmatpush.msrb.mxu1 %v656_v57  ;;  %v948_v57 = vld [vmem:[#allocation7 + $0x170] sm:$0xff] }
  0xa9   : > { %v406_v31 = vld [vmem:[#allocation3 + $0x60] sm:$0xff]  ;;  %686 = vmatpush.msra.mxu2 %v629_v39  ;;  %731 = vmatpush.msra.mxu3 %v641_v40 }
  0xaa   : > { %484 = vmatmul.f32.gmra.mxu0 %v398_v0  ;;  %1333 = vmatpush.msra.mxu1 %v1013_v54  ;;  %v937_v54 = vld [vmem:[#allocation7 + $0x118] sm:$0xff] }
  0xab   : > { %v408_v32 = vld [vmem:[#allocation3 + $0x70] sm:$0xff]  ;;  %687 = vmatpush.msra.mxu2 %v628_v42  ;;  %732 = vmatpush.msra.mxu3 %v640_v43 }
  0xad   : > { %688 = vmatpush.msra.mxu2 %v627_v45  ;;  %v520_v55 = vpop.f32.mrf.mxu1  ;;  %1253 = vmatpush.msrb.mxu3 %v949_v52  ;;  %v905_v52 = vld [vmem:[#allocation7 + $0x18] sm:$0xff] }
  0xaf   : > { %689 = vmatpush.msra.mxu2 %v626_v47  ;;  %1254 = vmatpush.msrb.mxu3 %v948_v57 }
  0xb1   : > { %690 = vmatpush.msra.mxu2 %v625_v49 }
  0xb2   : > { %487 = vmatmul.f32.gmra.mxu0 %v400_v3 }
  0xb3   : > { %691 = vmatpush.msra.mxu2 %v624_v51  ;;  %v933_v51 = vld [vmem:[#allocation7 + $0xf8] sm:$0xff] }
  0xb5   : > { %v523_v58 = vpop.f32.mrf.mxu1  ;;  %1233 = vmatpush.msrb.mxu2 %v933_v51  ;;  %v1002_v51 = vld [vmem:[#allocation7 + $0x320] sm:$0xff] }
  0xb7   : > { %1234 = vmatpush.msrb.mxu2 %v932_v56  ;;  %v904_v56 = vld [vmem:[#allocation7 + $0x10] sm:$0xff] }
  0xba   : > { %490 = vmatmul.f32.gmra.mxu0 %v402_v13 }
  0xbd   : > { %v526_v0 = vpop.f32.mrf.mxu1 }
  0xc2   : > { %493 = vmatmul.f32.gmra.mxu0 %v404_v25 }
  0xc5   : > { %v529_v7 = vpop.f32.mrf.mxu1 }
  0xca   : > { %496 = vmatmul.f32.gmra.mxu0 %v406_v31 }
  0xcd   : > { %v532_v15 = vpop.f32.mrf.mxu1 }
  0xd2   : > { %499 = vmatmul.f32.gmra.mxu0 %v408_v32 }
  0xd5   : > { %v535_v23 = vpop.f32.mrf.mxu1 }
  0xdd   : > { %v538_v33 = vpop.f32.mrf.mxu1 }
  0xe5   : > { %v541_v41 = vpop.f32.mrf.mxu1 }
 0x117   : > { %v479_v60 = vpop.f32.mrf.mxu0 }
 0x118   : > { %v480_v61 = vadd.f32 %v2247_v59, %v479_v60  ;;  %v931_v60 = vld [vmem:[#allocation7 + $0xe8] sm:$0xff] }
 0x119   : > { %1235 = vmatpush.msrb.mxu2 %v931_v60  ;;  %v936_v60 = vld [vmem:[#allocation7 + $0x110] sm:$0xff] }
 0x11a   : > { %v521_v62 = vadd.f32 %v520_v55, %v480_v61  ;;  %v916_v55 = vld [vmem:[#allocation7 + $0x70] sm:$0xff]  ;;  %v947_v61 = vld [vmem:[#allocation7 + $0x168] sm:$0xff] }
 0x11b   : > { %1214 = vmatpush.msrb.mxu0 %v916_v55  ;;  %1255 = vmatpush.msrb.mxu3 %v947_v61  ;;  %v1001_v55 = vld [vmem:[#allocation7 + $0x318] sm:$0xff]  ;;  %v1000_v61 = vld [vmem:[#allocation7 + $0x310] sm:$0xff] }
 0x11c   : > { %v544_v63 = vmax.f32 %v521_v62, 0.0  ;;  %v1011_v62 = vld [vmem:[#allocation7 + $0x368] sm:$0xff] }
 0x11e   : > { %552 = vst [vmem:[#allocation2 + $0x8] sm:$0xff] %v544_v63  ;;  %733 = vmatmul.f32.vlgmr.msra.gmra.mxu3 %v544_v63  ;;  %v2260_v63 = vld [vmem:[%s2312_s4] ss:$0 sm:$0xff] }
 0x11f   : > { %v482_v1 = vpop.f32.mrf.mxu0 }
 0x120   : > { %v483_v2 = vadd.f32 %v2247_v59, %v482_v1 }
 0x122   : > { %v524_v3 = vadd.f32 %v523_v58, %v483_v2  ;;  %v1012_v58 = vld [vmem:[#allocation7 + $0x370] sm:$0xff]  ;;  %v914_v2 = vld [vmem:[#allocation7 + $0x60] sm:$0xff] }
 0x123   : > { %1334 = vmatpush.msra.mxu1 %v1012_v58 }
 0x124   : > { %v545_v4 = vmax.f32 %v524_v3, 0.0  ;;  %v930_v3 = vld [vmem:[#allocation7 + $0xe0] sm:$0xff] }
 0x125   : > { %v556_v5 = vld [vmem:[#allocation2 + $0x7] sm:$0xff]  ;;  %1335 = vmatpush.msra.mxu1 %v1011_v62  ;;  %1236 = vmatpush.msrb.mxu2 %v930_v3 }
 0x126   : > { %553 = vst [vmem:[#allocation2 + $0x10] sm:$0xff] %v545_v4  ;;  %692 = vmatmul.f32.vlgmr.msra.gmra.mxu2 %v556_v5  ;;  %736 = vmatmul.f32.gmra.mxu3 %v545_v4  ;;  %v946_v4 = vld [vmem:[#allocation7 + $0x160] sm:$0xff]  ;;  %v935_v3 = vld [vmem:[#allocation7 + $0x108] sm:$0xff] }
 0x127   : > { %v485_v6 = vpop.f32.mrf.mxu0  ;;  %1256 = vmatpush.msrb.mxu3 %v946_v4  ;;  %v999_v4 = vld [vmem:[#allocation7 + $0x308] sm:$0xff] }
 0x128   : > { %v486_v8 = vadd.f32 %v2247_v59, %v485_v6  ;;  %v1010_v6 = vld [vmem:[#allocation7 + $0x360] sm:$0xff] }
 0x129   : > { %1336 = vmatpush.msra.mxu1 %v1010_v6 }
 0x12a   : > { %v527_v9 = vadd.f32 %v526_v0, %v486_v8  ;;  %v929_v8 = vld [vmem:[#allocation7 + $0xd8] sm:$0xff] }
 0x12b   : > { %1237 = vmatpush.msrb.mxu2 %v929_v8  ;;  %v902_v8 = vld [vmem:[#allocation7] sm:$0xff] }
 0x12c   : > { %v546_v10 = vmax.f32 %v527_v9, 0.0  ;;  %v945_v9 = vld [vmem:[#allocation7 + $0x158] sm:$0xff] }
 0x12d   : > { %v557_v11 = vld [vmem:[#allocation2 + $0xf] sm:$0xff]  ;;  %1257 = vmatpush.msrb.mxu3 %v945_v9  ;;  %v918_v9 = vld [vmem:[#allocation7 + $0x80] sm:$0xff] }
 0x12e   : > { %v560_v12 = vld [vmem:[#allocation2 + $0x9] sm:$0xff]  ;;  %695 = vmatmul.f32.gmra.mxu2 %v557_v11  ;;  %739 = vmatmul.f32.gmra.mxu3 %v546_v10  ;;  %v561_v19 = vld [vmem:[#allocation2 + $0x11] sm:$0xff] }
 0x12f   : > { %564 = vst [vmem:[#allocation2 + $0x8] sm:$0xff] %v546_v10  ;;  %774 = vmatmul.f32.vlgmr.msrb.gmra.mxu1 %v560_v12  ;;  %v488_v13 = vpop.f32.mrf.mxu0  ;;  %v1009_v12 = vld [vmem:[#allocation7 + $0x358] sm:$0xff] }
 0x130   : > { %v489_v14 = vadd.f32 %v2247_v59, %v488_v13  ;;  %1337 = vmatpush.msra.mxu1 %v1009_v12  ;;  %v912_v13 = vld [vmem:[#allocation7 + $0x50] sm:$0xff]  ;;  %v965_v12 = vld [vmem:[#allocation7 + $0x1f8] sm:$0xff] }
 0x132   : > { %v530_v16 = vadd.f32 %v529_v7, %v489_v14  ;;  %v913_v7 = vld [vmem:[#allocation7 + $0x58] sm:$0xff]  ;;  %v928_v14 = vld [vmem:[#allocation7 + $0xd0] sm:$0xff] }
 0x133   : > { %1238 = vmatpush.msrb.mxu2 %v928_v14 }
 0x134   : > { %v547_v17 = vmax.f32 %v530_v16, 0.0 }
 0x136   : > { %v568_v18 = vld [vmem:[#allocation2 + $0x7] sm:$0xff]  ;;  %742 = vmatmul.f32.gmra.mxu3 %v547_v17  ;;  %565 = vst [vmem:[#allocation2 + $0x10] sm:$0xff] %v547_v17  ;;  %v1008_v17 = vld [vmem:[#allocation7 + $0x350] sm:$0xff] }
 0x137   : > { %698 = vmatmul.f32.gmra.mxu2 %v568_v18  ;;  %777 = vmatmul.f32.gmra.mxu1 %v561_v19  ;;  %v491_v20 = vpop.f32.mrf.mxu0  ;;  %v911_v18 = vld [vmem:[#allocation7 + $0x48] sm:$0xff] }
 0x138   : > { %v492_v21 = vadd.f32 %v2247_v59, %v491_v20  ;;  %1338 = vmatpush.msra.mxu1 %v1008_v17  ;;  %v927_v19 = vld [vmem:[#allocation7 + $0xc8] sm:$0xff]  ;;  %v1077_v17 = vld [vmem:[#allocation7 + $0x578] sm:$0xff] }
 0x139   : > { %v943_v20 = vld [vmem:[#allocation7 + $0x148] sm:$0xff]  ;;  %1239 = vmatpush.msrb.mxu2 %v927_v19  ;;  %v980_v19 = vld [vmem:[#allocation7 + $0x270] sm:$0xff] }
 0x13a   : > { %v533_v22 = vadd.f32 %v532_v15, %v492_v21  ;;  %v944_v15 = vld [vmem:[#allocation7 + $0x150] sm:$0xff] }
 0x13b   : > { %1258 = vmatpush.msrb.mxu3 %v944_v15 }
 0x13c   : > { %v548_v24 = vmax.f32 %v533_v22, 0.0  ;;  %v1007_v22 = vld [vmem:[#allocation7 + $0x348] sm:$0xff] }
 0x13d   : > { %v569_v25 = vld [vmem:[#allocation2 + $0xf] sm:$0xff]  ;;  %1259 = vmatpush.msrb.mxu3 %v943_v20  ;;  %1339 = vmatpush.msra.mxu1 %v1007_v22 }
 0x13e   : > { %v572_v26 = vld [vmem:[#allocation2 + $0x9] sm:$0xff]  ;;  %745 = vmatmul.f32.gmra.mxu3 %v548_v24  ;;  %v573_v32 = vld [vmem:[#allocation2 + $0x11] sm:$0xff] }
 0x13f   : > { %701 = vmatmul.f32.gmra.mxu2 %v569_v25  ;;  %576 = vst [vmem:[#allocation2 + $0x8] sm:$0xff] %v548_v24  ;;  %780 = vmatmul.f32.gmra.mxu1 %v572_v26  ;;  %v494_v27 = vpop.f32.mrf.mxu0  ;;  %v910_v24 = vld [vmem:[#allocation7 + $0x40] sm:$0xff]  ;;  %v996_v20 = vld [vmem:[#allocation7 + $0x2f0] sm:$0xff] }
 0x140   : > { %v495_v28 = vadd.f32 %v2247_v59, %v494_v27  ;;  %v926_v25 = vld [vmem:[#allocation7 + $0xc0] sm:$0xff]  ;;  %v1076_v22 = vld [vmem:[#allocation7 + $0x570] sm:$0xff] }
 0x141   : > { %v942_v26 = vld [vmem:[#allocation7 + $0x140] sm:$0xff]  ;;  %1240 = vmatpush.msrb.mxu2 %v926_v25  ;;  %v979_v25 = vld [vmem:[#allocation7 + $0x268] sm:$0xff] }
 0x142   : > { %v536_v29 = vadd.f32 %v535_v23, %v495_v28  ;;  %v1006_v28 = vld [vmem:[#allocation7 + $0x340] sm:$0xff]  ;;  %1260 = vmatpush.msrb.mxu3 %v942_v26  ;;  %v995_v26 = vld [vmem:[#allocation7 + $0x2e8] sm:$0xff] }
 0x143   : > { %1340 = vmatpush.msra.mxu1 %v1006_v28 }
 0x144   : > { %v549_v30 = vmax.f32 %v536_v29, 0.0 }
 0x146   : > { %v580_v31 = vld [vmem:[#allocation2 + $0x7] sm:$0xff]  ;;  %748 = vmatmul.f32.gmra.mxu3 %v549_v30  ;;  %577 = vst [vmem:[#allocation2 + $0x10] sm:$0xff] %v549_v30  ;;  %v909_v30 = vld [vmem:[#allocation7 + $0x38] sm:$0xff] }
 0x147   : > { %704 = vmatmul.f32.gmra.mxu2 %v580_v31  ;;  %783 = vmatmul.f32.gmra.mxu1 %v573_v32  ;;  %v497_v34 = vpop.f32.mrf.mxu0  ;;  %v925_v31 = vld [vmem:[#allocation7 + $0xb8] sm:$0xff] }
 0x148   : > { %v498_v35 = vadd.f32 %v2247_v59, %v497_v34  ;;  %v941_v32 = vld [vmem:[#allocation7 + $0x138] sm:$0xff]  ;;  %1241 = vmatpush.msrb.mxu2 %v925_v31 }
 0x149   : > { %1261 = vmatpush.msrb.mxu3 %v941_v32 }
 0x14a   : > { %v539_v36 = vadd.f32 %v538_v33, %v498_v35  ;;  %v1005_v35 = vld [vmem:[#allocation7 + $0x338] sm:$0xff] }
 0x14b   : > { %1341 = vmatpush.msra.mxu1 %v1005_v35 }
 0x14c   : > { %v550_v37 = vmax.f32 %v539_v36, 0.0  ;;  %v908_v36 = vld [vmem:[#allocation7 + $0x30] sm:$0xff] }
 0x14d   : > { %v581_v38 = vld [vmem:[#allocation2 + $0xf] sm:$0xff] }
 0x14e   : > { %v584_v39 = vld [vmem:[#allocation2 + $0x9] sm:$0xff]  ;;  %751 = vmatmul.f32.gmra.mxu3 %v550_v37  ;;  %v585_v46 = vld [vmem:[#allocation2 + $0x11] sm:$0xff] }
 0x14f   : > { %707 = vmatmul.f32.gmra.mxu2 %v581_v38  ;;  %588 = vst [vmem:[#allocation2 + $0x8] sm:$0xff] %v550_v37  ;;  %786 = vmatmul.f32.gmra.mxu1 %v584_v39  ;;  %v500_v40 = vpop.f32.mrf.mxu0  ;;  %v924_v37 = vld [vmem:[#allocation7 + $0xb0] sm:$0xff] }
 0x150   : > { %v501_v42 = vadd.f32 %v2247_v59, %v500_v40  ;;  %v915_v59 = vld [vmem:[#allocation7 + $0x68] sm:$0xff]  ;;  %v940_v38 = vld [vmem:[#allocation7 + $0x130] sm:$0xff]  ;;  %1242 = vmatpush.msrb.mxu2 %v924_v37 }
 0x151   : > { %1215 = vmatpush.msrb.mxu0 %v915_v59  ;;  %v1004_v40 = vld [vmem:[#allocation7 + $0x330] sm:$0xff]  ;;  %1262 = vmatpush.msrb.mxu3 %v940_v38  ;;  %v962_v38 = vld [vmem:[#allocation7 + $0x1e0] sm:$0xff] }
 0x152   : > { %v542_v43 = vadd.f32 %v541_v41, %v501_v42  ;;  %1342 = vmatpush.msra.mxu1 %v1004_v40  ;;  %v907_v41 = vld [vmem:[#allocation7 + $0x28] sm:$0xff]  ;;  %v920_v59 = vld [vmem:[#allocation7 + $0x90] sm:$0xff]  ;;  %v994_v40 = vld [vmem:[#allocation7 + $0x2e0] sm:$0xff] }
 0x153   : > { %1216 = vmatpush.msrb.mxu0 %v914_v2  ;;  %v923_v42 = vld [vmem:[#allocation7 + $0xa8] sm:$0xff] }
 0x154   : > { %v551_v44 = vmax.f32 %v542_v43, 0.0  ;;  %v939_v43 = vld [vmem:[#allocation7 + $0x128] sm:$0xff]  ;;  %1243 = vmatpush.msrb.mxu2 %v923_v42 }
 0x155   : > { %1217 = vmatpush.msrb.mxu0 %v913_v7  ;;  %1263 = vmatpush.msrb.mxu3 %v939_v43 }
 0x156   : > { %v592_v45 = vld [vmem:[#allocation2 + $0x7] sm:$0xff]  ;;  %589 = vst [vmem:[#allocation2 + $0x10] sm:$0xff] %v551_v44  ;;  %754 = vmatmul.f32.gmra.mxu3 %v551_v44 }
 0x157   : > { %710 = vmatmul.f32.gmra.mxu2 %v592_v45  ;;  %789 = vmatmul.f32.gmra.mxu1 %v585_v46  ;;  %v1003_v45 = vld [vmem:[#allocation7 + $0x328] sm:$0xff] }
 0x158   : > { %1218 = vmatpush.msrb.mxu0 %v912_v13  ;;  %1343 = vmatpush.msra.mxu1 %v1003_v45  ;;  %v981_v13 = vld [vmem:[#allocation7 + $0x278] sm:$0xff]  ;;  %v1074_v45 = vld [vmem:[#allocation7 + $0x560] sm:$0xff] }
 0x15a   : > { %1219 = vmatpush.msrb.mxu0 %v911_v18  ;;  %1344 = vmatpush.msra.mxu1 %v1002_v51  ;;  %v964_v18 = vld [vmem:[#allocation7 + $0x1f0] sm:$0xff] }
 0x15b   : > { %v960_v51 = vld [vmem:[#allocation7 + $0x1d0] sm:$0xff] }
 0x15c   : > { %1220 = vmatpush.msrb.mxu0 %v910_v24  ;;  %1345 = vmatpush.msra.mxu1 %v1001_v55  ;;  %v963_v24 = vld [vmem:[#allocation7 + $0x1e8] sm:$0xff]  ;;  %v1072_v55 = vld [vmem:[#allocation7 + $0x550] sm:$0xff] }
 0x15d   : > { %v593_v47 = vld [vmem:[#allocation2 + $0xf] sm:$0xff] }
 0x15e   : > { %v596_v48 = vld [vmem:[#allocation2 + $0x9] sm:$0xff]  ;;  %v597_v49 = vld [vmem:[#allocation2 + $0x11] sm:$0xff]  ;;  %1221 = vmatpush.msrb.mxu0 %v909_v30  ;;  %1346 = vmatpush.msra.mxu1 %v1000_v61 }
 0x15f   : > { %713 = vmatmul.f32.gmra.mxu2 %v593_v47  ;;  %792 = vmatmul.f32.gmra.mxu1 %v596_v48  ;;  %v906_v47 = vld [vmem:[#allocation7 + $0x20] sm:$0xff]  ;;  %v1071_v61 = vld [vmem:[#allocation7 + $0x548] sm:$0xff] }
 0x160   : > { %1222 = vmatpush.msrb.mxu0 %v908_v36  ;;  %v922_v48 = vld [vmem:[#allocation7 + $0xa0] sm:$0xff]  ;;  %1347 = vmatpush.msra.mxu1 %v999_v4 }
 0x161   : > { %1244 = vmatpush.msrb.mxu2 %v922_v48  ;;  %v1070_v4 = vld [vmem:[#allocation7 + $0x540] sm:$0xff] }
 0x162   : > { %1223 = vmatpush.msrb.mxu0 %v907_v41 }
 0x164   : > { %1224 = vmatpush.msrb.mxu0 %v906_v47  ;;  %v977_v47 = vld [vmem:[#allocation7 + $0x258] sm:$0xff] }
 0x166   : > { %1225 = vmatpush.msrb.mxu0 %v905_v52 }
 0x167   : > { %795 = vmatmul.f32.gmra.mxu1 %v597_v49  ;;  %v938_v49 = vld [vmem:[#allocation7 + $0x120] sm:$0xff] }
 0x168   : > { %1264 = vmatpush.msrb.mxu3 %v938_v49  ;;  %1226 = vmatpush.msrb.mxu0 %v904_v56  ;;  %v993_v49 = vld [vmem:[#allocation7 + $0x2d8] sm:$0xff] }
 0x16a   : > { %1265 = vmatpush.msrb.mxu3 %v937_v54  ;;  %v992_v54 = vld [vmem:[#allocation7 + $0x2d0] sm:$0xff] }
 0x16c   : > { %1266 = vmatpush.msrb.mxu3 %v936_v60 }
 0x16e   : > { %1267 = vmatpush.msrb.mxu3 %v935_v3 }
 0x1a1   : > { %v734_v53 = vpop.f32.mrf.mxu3 }
 0x1a9   : > { %v693_v0 = vpop.f32.mrf.mxu2  ;;  %v737_v1 = vpop.f32.mrf.mxu3 }
 0x1aa   : > { %v694_v5 = vadd.f32 %v2260_v63, %v693_v0  ;;  %v903_v0 = vld [vmem:[#allocation7 + $0x8] sm:$0xff] }
 0x1ab   : > { %1227 = vmatpush.msrb.mxu0 %v903_v0 }
 0x1ac   : > { %v735_v10 = vadd.f32 %v734_v53, %v694_v5  ;;  %v775_v11 = vpop.f32.mrf.mxu1  ;;  %v921_v53 = vld [vmem:[#allocation7 + $0x98] sm:$0xff] }
 0x1ad   : > { %1245 = vmatpush.msrb.mxu2 %v921_v53  ;;  %1228 = vmatpush.msrb.mxu0 %v902_v8  ;;  %v976_v53 = vld [vmem:[#allocation7 + $0x250] sm:$0xff] }
 0x1ae   : > { %v776_v16 = vadd.f32 %v775_v11, %v735_v10  ;;  %v934_v10 = vld [vmem:[#allocation7 + $0x100] sm:$0xff] }
 0x1af   : > { %1246 = vmatpush.msrb.mxu2 %v920_v59  ;;  %v998_v11 = vld [vmem:[#allocation7 + $0x300] sm:$0xff]  ;;  %1268 = vmatpush.msrb.mxu3 %v934_v10  ;;  %v991_v59 = vld [vmem:[#allocation7 + $0x2c8] sm:$0xff]  ;;  %v956_v10 = vld [vmem:[#allocation7 + $0x1b0] sm:$0xff] }
 0x1b0   : > { %v799_v21 = vmax.f32 %v776_v16, 0.0  ;;  %1348 = vmatpush.msra.mxu1 %v998_v11  ;;  %v997_v16 = vld [vmem:[#allocation7 + $0x2f8] sm:$0xff]  ;;  %1273 = vmatpush.msra.mxu0 %v965_v12  ;;  %v972_v12 = vld [vmem:[#allocation7 + $0x230] sm:$0xff] }
 0x1b1   : > { %v696_v23 = vpop.f32.mrf.mxu2  ;;  %v740_v29 = vpop.f32.mrf.mxu3  ;;  %1313 = vmatpush.msra.mxu3 %v997_v16  ;;  %v971_v16 = vld [vmem:[#allocation7 + $0x228] sm:$0xff] }
 0x1b2   : > { %807 = vst [vmem:[#allocation5] sm:$0xff] %v799_v21  ;;  %v697_v27 = vadd.f32 %v2260_v63, %v696_v23  ;;  %1413 = vmatpush.msrb.mxu1 %v1077_v17  ;;  %1274 = vmatpush.msra.mxu0 %v964_v18  ;;  %v987_v17 = vld [vmem:[#allocation7 + $0x2a8] sm:$0xff] }
 0x1b3   : > { %1314 = vmatpush.msra.mxu3 %v996_v20  ;;  %v954_v20 = vld [vmem:[#allocation7 + $0x1a0] sm:$0xff] }
 0x1b4   : > { %v738_v33 = vadd.f32 %v737_v1, %v697_v27  ;;  %v778_v34 = vpop.f32.mrf.mxu1  ;;  %v919_v1 = vld [vmem:[#allocation7 + $0x88] sm:$0xff]  ;;  %1414 = vmatpush.msrb.mxu1 %v1076_v22  ;;  %1275 = vmatpush.msra.mxu0 %v963_v24  ;;  %v986_v22 = vld [vmem:[#allocation7 + $0x2a0] sm:$0xff]  ;;  %v953_v24 = vld [vmem:[#allocation7 + $0x198] sm:$0xff] }
 0x1b5   : > { %1247 = vmatpush.msrb.mxu2 %v919_v1  ;;  %v1075_v27 = vld [vmem:[#allocation7 + $0x568] sm:$0xff]  ;;  %1315 = vmatpush.msra.mxu3 %v995_v26  ;;  %v974_v1 = vld [vmem:[#allocation7 + $0x240] sm:$0xff]  ;;  %v985_v26 = vld [vmem:[#allocation7 + $0x298] sm:$0xff] }
 0x1b6   : > { %v779_v39 = vadd.f32 %v778_v34, %v738_v33  ;;  %1415 = vmatpush.msrb.mxu1 %v1075_v27  ;;  %1276 = vmatpush.msra.mxu0 %v962_v38 }
 0x1b7   : > { %1248 = vmatpush.msrb.mxu2 %v918_v9  ;;  %1316 = vmatpush.msra.mxu3 %v994_v40  ;;  %v1069_v9 = vld [vmem:[#allocation7 + $0x538] sm:$0xff] }
 0x1b8   : > { %v800_v44 = vmax.f32 %v779_v39, 0.0  ;;  %v978_v39 = vld [vmem:[#allocation7 + $0x260] sm:$0xff]  ;;  %1416 = vmatpush.msrb.mxu1 %v1074_v45 }
 0x1b9   : > { %v743_v62 = vpop.f32.mrf.mxu3  ;;  %1293 = vmatpush.msra.mxu2 %v981_v13  ;;  %1317 = vmatpush.msra.mxu3 %v993_v49  ;;  %v988_v13 = vld [vmem:[#allocation7 + $0x2b0] sm:$0xff] }
 0x1ba   : > { %v699_v46 = vpop.f32.mrf.mxu2  ;;  %808 = vst [vmem:[#allocation5 + $0x8] sm:$0xff] %v800_v44 }
 0x1bb   : > { %v700_v50 = vadd.f32 %v2260_v63, %v699_v46  ;;  %1294 = vmatpush.msra.mxu2 %v980_v19  ;;  %v961_v46 = vld [vmem:[#allocation7 + $0x1d8] sm:$0xff]  ;;  %1318 = vmatpush.msra.mxu3 %v992_v54  ;;  %v1067_v19 = vld [vmem:[#allocation7 + $0x528] sm:$0xff] }
 0x1bc   : > { %v781_v58 = vpop.f32.mrf.mxu1  ;;  %1277 = vmatpush.msra.mxu0 %v961_v46 }
 0x1bd   : > { %v741_v57 = vadd.f32 %v740_v29, %v700_v50  ;;  %1295 = vmatpush.msra.mxu2 %v979_v25  ;;  %v1073_v50 = vld [vmem:[#allocation7 + $0x558] sm:$0xff]  ;;  %1319 = vmatpush.msra.mxu3 %v991_v59  ;;  %v950_v59 = vld [vmem:[#allocation7 + $0x180] sm:$0xff] }
 0x1be   : > { %1417 = vmatpush.msrb.mxu1 %v1073_v50  ;;  %1278 = vmatpush.msra.mxu0 %v960_v51  ;;  %v969_v25 = vld [vmem:[#allocation7 + $0x218] sm:$0xff] }
 0x1bf   : > { %v782_v2 = vadd.f32 %v781_v58, %v741_v57  ;;  %1296 = vmatpush.msra.mxu2 %v978_v39  ;;  %v959_v57 = vld [vmem:[#allocation7 + $0x1c8] sm:$0xff] }
 0x1c0   : > { %v975_v58 = vld [vmem:[#allocation7 + $0x248] sm:$0xff]  ;;  %1418 = vmatpush.msrb.mxu1 %v1072_v55  ;;  %1279 = vmatpush.msra.mxu0 %v959_v57 }
 0x1c1   : > { %v801_v5 = vmax.f32 %v782_v2, 0.0  ;;  %v746_v23 = vpop.f32.mrf.mxu3  ;;  %1297 = vmatpush.msra.mxu2 %v977_v47  ;;  %v990_v2 = vld [vmem:[#allocation7 + $0x2c0] sm:$0xff] }
 0x1c2   : > { %v702_v6 = vpop.f32.mrf.mxu2  ;;  %1419 = vmatpush.msrb.mxu1 %v1071_v61  ;;  %1320 = vmatpush.msra.mxu3 %v990_v2  ;;  %v1062_v2 = vld [vmem:[#allocation7 + $0x500] sm:$0xff] }
 0x1c3   : > { %809 = vst [vmem:[#allocation5 + $0x10] sm:$0xff] %v801_v5  ;;  %v703_v7 = vadd.f32 %v2260_v63, %v702_v6  ;;  %1298 = vmatpush.msra.mxu2 %v976_v53  ;;  %v957_v5 = vld [vmem:[#allocation7 + $0x1b8] sm:$0xff] }
 0x1c4   : > { %v784_v15 = vpop.f32.mrf.mxu1  ;;  %v973_v6 = vld [vmem:[#allocation7 + $0x238] sm:$0xff]  ;;  %1420 = vmatpush.msrb.mxu1 %v1070_v4 }
 0x1c5   : > { %v744_v14 = vadd.f32 %v743_v62, %v703_v7  ;;  %v958_v62 = vld [vmem:[#allocation7 + $0x1c0] sm:$0xff]  ;;  %1299 = vmatpush.msra.mxu2 %v975_v58  ;;  %v989_v7 = vld [vmem:[#allocation7 + $0x2b8] sm:$0xff] }
 0x1c6   : > { %1280 = vmatpush.msra.mxu0 %v958_v62  ;;  %1321 = vmatpush.msra.mxu3 %v989_v7  ;;  %v966_v62 = vld [vmem:[#allocation7 + $0x200] sm:$0xff] }
 0x1c7   : > { %v785_v21 = vadd.f32 %v784_v15, %v744_v14  ;;  %1300 = vmatpush.msra.mxu2 %v974_v1  ;;  %v1068_v14 = vld [vmem:[#allocation7 + $0x530] sm:$0xff]  ;;  %v955_v15 = vld [vmem:[#allocation7 + $0x1a8] sm:$0xff]  ;;  %1421 = vmatpush.msrb.mxu1 %v1069_v9  ;;  %v982_v1 = vld [vmem:[#allocation7 + $0x280] sm:$0xff] }
 0x1c8   : > { %1281 = vmatpush.msra.mxu0 %v957_v5  ;;  %1322 = vmatpush.msra.mxu3 %v988_v13 }
 0x1c9   : > { %v802_v28 = vmax.f32 %v785_v21, 0.0  ;;  %v749_v35 = vpop.f32.mrf.mxu3  ;;  %1301 = vmatpush.msra.mxu2 %v973_v6  ;;  %1422 = vmatpush.msrb.mxu1 %v1068_v14  ;;  %v970_v21 = vld [vmem:[#allocation7 + $0x220] sm:$0xff] }
 0x1ca   : > { %v705_v29 = vpop.f32.mrf.mxu2  ;;  %1282 = vmatpush.msra.mxu0 %v956_v10  ;;  %1323 = vmatpush.msra.mxu3 %v987_v17  ;;  %v815_v27 = vld [vmem:[#allocation5] ss:$16 sm:$0x3]  ;;  %v835_v38 = vld [vmem:[#allocation5 + $0x4] ss:$16 sm:$0x3] }
 0x1cb   : > { %v706_v30 = vadd.f32 %v2260_v63, %v705_v29  ;;  %810 = vst [vmem:[#allocation5 + $0x18] sm:$0xff] %v802_v28  ;;  %1302 = vmatpush.msra.mxu2 %v972_v12  ;;  %v820_v28 = vld [vmem:[#allocation5 + $0x1] ss:$16 sm:$0x3]  ;;  %1423 = vmatpush.msrb.mxu1 %v1067_v19 }
 0x1cc   : > { %v787_v32 = vpop.f32.mrf.mxu1  ;;  %1283 = vmatpush.msra.mxu0 %v955_v15  ;;  %1324 = vmatpush.msra.mxu3 %v986_v22  ;;  %v845_v49 = vld [vmem:[#allocation5 + $0x6] ss:$16 sm:$0x3]  ;;  %v850_v55 = vld [vmem:[#allocation5 + $0x7] ss:$16 sm:$0x3] }
 0x1cd   : > { %v747_v31 = vadd.f32 %v746_v23, %v706_v30  ;;  %v1066_v23 = vld [vmem:[#allocation7 + $0x520] sm:$0xff]  ;;  %1303 = vmatpush.msra.mxu2 %v971_v16  ;;  %v952_v30 = vld [vmem:[#allocation7 + $0x190] sm:$0xff] }
 0x1ce   : > { %1284 = vmatpush.msra.mxu0 %v954_v20  ;;  %1424 = vmatpush.msrb.mxu1 %v1066_v23 }
 0x1cf   : > { %v788_v33 = vadd.f32 %v787_v32, %v747_v31  ;;  %v968_v31 = vld [vmem:[#allocation7 + $0x210] sm:$0xff]  ;;  %1304 = vmatpush.msra.mxu2 %v970_v21  ;;  %1325 = vmatpush.msra.mxu3 %v985_v26 }
 0x1d0   : > { %v825_v32 = vld [vmem:[#allocation5 + $0x2] ss:$16 sm:$0x3]  ;;  %1285 = vmatpush.msra.mxu0 %v953_v24 }
 0x1d1   : > { %v803_v34 = vmax.f32 %v788_v33, 0.0  ;;  %v752_v56 = vpop.f32.mrf.mxu3  ;;  %v830_v33 = vld [vmem:[#allocation5 + $0x3] ss:$16 sm:$0x3]  ;;  %1305 = vmatpush.msra.mxu2 %v969_v25 }
 0x1d2   : > { %v708_v36 = vpop.f32.mrf.mxu2  ;;  %1286 = vmatpush.msra.mxu0 %v952_v30  ;;  %v860_v9 = vld [vmem:[#allocation5 + $0x9] ss:$16 sm:$0x3]  ;;  %v865_v10 = vld [vmem:[#allocation5 + $0xa] ss:$16 sm:$0x3] }
 0x1d3   : > { %811 = vst [vmem:[#allocation5 + $0x20] sm:$0xff] %v803_v34  ;;  %v709_v37 = vadd.f32 %v2260_v63, %v708_v36  ;;  %v1064_v36 = vld [vmem:[#allocation7 + $0x510] sm:$0xff]  ;;  %1306 = vmatpush.msra.mxu2 %v968_v31  ;;  %v875_v12 = vld [vmem:[#allocation5 + $0xc] ss:$16 sm:$0x3] }
 0x1d4   : > { %v790_v42 = vpop.f32.mrf.mxu1  ;;  %v880_v15 = vld [vmem:[#allocation5 + $0xd] ss:$16 sm:$0x3]  ;;  %v885_v20 = vld [vmem:[#allocation5 + $0xe] ss:$16 sm:$0x3] }
 0x1d5   : > { %v750_v41 = vadd.f32 %v749_v35, %v709_v37  ;;  %v984_v35 = vld [vmem:[#allocation7 + $0x290] sm:$0xff]  ;;  %v951_v37 = vld [vmem:[#allocation7 + $0x188] sm:$0xff]  ;;  %v1045_v30 = vld [vmem:[#allocation7 + $0x478] sm:$0xff] }
 0x1d6   : > { %1326 = vmatpush.msra.mxu3 %v984_v35  ;;  %1287 = vmatpush.msra.mxu0 %v951_v37  ;;  %v890_v25 = vld [vmem:[#allocation5 + $0xf] ss:$16 sm:$0x3] }
 0x1d7   : > { %v791_v43 = vadd.f32 %v790_v42, %v750_v41  ;;  %v967_v41 = vld [vmem:[#allocation7 + $0x208] sm:$0xff] }
 0x1d8   : > { %v983_v42 = vld [vmem:[#allocation7 + $0x288] sm:$0xff]  ;;  %1307 = vmatpush.msra.mxu2 %v967_v41  ;;  %1288 = vmatpush.msra.mxu0 %v950_v59  ;;  %v1056_v59 = vld [vmem:[#allocation7 + $0x4d0] sm:$0xff] }
 0x1d9   : > { %v804_v44 = vmax.f32 %v791_v43, 0.0  ;;  %v755_v29 = vpop.f32.mrf.mxu3  ;;  %v840_v43 = vld [vmem:[#allocation5 + $0x5] ss:$16 sm:$0x3]  ;;  %1327 = vmatpush.msra.mxu3 %v983_v42  ;;  %v1027_v41 = vld [vmem:[#allocation7 + $0x3e8] sm:$0xff] }
 0x1da   : > { %v711_v48 = vpop.f32.mrf.mxu2  ;;  %1308 = vmatpush.msra.mxu2 %v966_v62  ;;  %v1043_v42 = vld [vmem:[#allocation7 + $0x468] sm:$0xff] }
 0x1db   : > { %812 = vst [vmem:[#allocation5 + $0x28] sm:$0xff] %v804_v44  ;;  %v712_v52 = vadd.f32 %v2260_v63, %v711_v48  ;;  %v1063_v48 = vld [vmem:[#allocation7 + $0x508] sm:$0xff]  ;;  %1328 = vmatpush.msra.mxu3 %v982_v1 }
 0x1dc   : > { %v793_v0 = vpop.f32.mrf.mxu1  ;;  %v1039_v62 = vld [vmem:[#allocation7 + $0x448] sm:$0xff] }
 0x1dd   : > { %v753_v60 = vadd.f32 %v752_v56, %v712_v52  ;;  %v1055_v1 = vld [vmem:[#allocation7 + $0x4c8] sm:$0xff] }
 0x1df   : > { %v794_v3 = vadd.f32 %v793_v0, %v753_v60 }
 0x1e1   : > { %v805_v8 = vmax.f32 %v794_v3, 0.0 }
 0x1e2   : > { %v714_v11 = vpop.f32.mrf.mxu2 }
 0x1e3   : > { %813 = vst [vmem:[#allocation5 + $0x30] sm:$0xff] %v805_v8  ;;  %v715_v18 = vadd.f32 %v2260_v63, %v714_v11  ;;  %v1065_v63 = vld [vmem:[#allocation7 + $0x518] sm:$0xff] }
 0x1e4   : > { %v796_v54 = vpop.f32.mrf.mxu1  ;;  %1425 = vmatpush.msrb.mxu1 %v1065_v63  ;;  %v855_v8 = vld [vmem:[#allocation5 + $0x8] ss:$16 sm:$0x3]  ;;  %v870_v11 = vld [vmem:[#allocation5 + $0xb] ss:$16 sm:$0x3] }
 0x1e5   : > { %v756_v34 = vadd.f32 %v755_v29, %v715_v18 }
 0x1e6   : > { %1426 = vmatpush.msrb.mxu1 %v1064_v36  ;;  %v1028_v36 = vld [vmem:[#allocation7 + $0x3f0] sm:$0xff] }
 0x1e7   : > { %v797_v58 = vadd.f32 %v796_v54, %v756_v34  ;;  %v1057_v54 = vld [vmem:[#allocation7 + $0x4d8] sm:$0xff] }
 0x1e8   : > { %1427 = vmatpush.msrb.mxu1 %v1063_v48  ;;  %v1058_v48 = vld [vmem:[#allocation7 + $0x4e0] sm:$0xff] }
 0x1e9   : > { %v806_v4 = vmax.f32 %v797_v58, 0.0  ;;  %v1141_v58 = vld [vmem:[#allocation7 + $0x778] sm:$0xff] }
 0x1ea   : > { %v816_v39 = vld [vmem:[#allocation5] ss:$16 sm:$0xc]  ;;  %v821_v40 = vld [vmem:[#allocation5 + $0x1] ss:$16 sm:$0xc]  ;;  %1428 = vmatpush.msrb.mxu1 %v1062_v2 }
 0x1eb   : > { %v817_v44 = vor.u32 %v816_v39, %v815_v27  ;;  %v822_v45 = vor.u32 %v821_v40, %v820_v28  ;;  %v826_v46 = vld [vmem:[#allocation5 + $0x2] ss:$16 sm:$0xc]  ;;  %v831_v47 = vld [vmem:[#allocation5 + $0x3] ss:$16 sm:$0xc] }
 0x1ec   : > { %v827_v50 = vor.u32 %v826_v46, %v825_v32  ;;  %v832_v51 = vor.u32 %v831_v47, %v830_v33  ;;  %v836_v52 = vld [vmem:[#allocation5 + $0x4] ss:$16 sm:$0xc]  ;;  %v841_v53 = vld [vmem:[#allocation5 + $0x5] ss:$16 sm:$0xc] }
 0x1ed   : > { %818 = vst [vmem:[#allocation6] sm:$0xf] %v817_v44  ;;  %v837_v56 = vor.u32 %v836_v52, %v835_v38  ;;  %v846_v57 = vld [vmem:[#allocation5 + $0x6] ss:$16 sm:$0xc]  ;;  %v842_v60 = vor.u32 %v841_v53, %v840_v43  ;;  %v1029_v28 = vld [vmem:[#allocation7 + $0x3f8] sm:$0xff] }
 0x1ee   : > { %823 = vst [vmem:[#allocation6 + $0x4] sm:$0xf] %v822_v45  ;;  %v851_v61 = vld [vmem:[#allocation5 + $0x7] ss:$16 sm:$0xc]  ;;  %v847_v0 = vor.u32 %v846_v57, %v845_v49  ;;  %v1061_v33 = vld [vmem:[#allocation7 + $0x4f8] sm:$0xff] }
 0x1ef   : > { %828 = vst [vmem:[#allocation6 + $0x8] sm:$0xf] %v827_v50  ;;  %v852_v3 = vor.u32 %v851_v61, %v850_v55  ;;  %v1044_v38 = vld [vmem:[#allocation7 + $0x470] sm:$0xff]  ;;  %v1059_v43 = vld [vmem:[#allocation7 + $0x4e8] sm:$0xff]  ;;  %v1026_v44 = vld [vmem:[#allocation7 + $0x3e0] sm:$0xff] }
 0x1f0   : > { %833 = vst [vmem:[#allocation6 + $0xc] sm:$0xf] %v832_v51  ;;  %v1060_v40 = vld [vmem:[#allocation7 + $0x4f0] sm:$0xff]  ;;  %v1042_v45 = vld [vmem:[#allocation7 + $0x460] sm:$0xff]  ;;  %v1025_v52 = vld [vmem:[#allocation7 + $0x3d8] sm:$0xff] }
 0x1f1   : > { %838 = vst [vmem:[#allocation6 + $0x10] sm:$0xf] %v837_v56  ;;  %v1041_v53 = vld [vmem:[#allocation7 + $0x458] sm:$0xff]  ;;  %v1024_v56 = vld [vmem:[#allocation7 + $0x3d0] sm:$0xff]  ;;  %v1023_v61 = vld [vmem:[#allocation7 + $0x3c8] sm:$0xff] }
 0x1f2   : > { %843 = vst [vmem:[#allocation6 + $0x14] sm:$0xf] %v842_v60  ;;  %v1040_v57 = vld [vmem:[#allocation7 + $0x450] sm:$0xff]  ;;  %v1022_v2 = vld [vmem:[#allocation7 + $0x3c0] sm:$0xff] }
 0x1f3   : > { %848 = vst [vmem:[#allocation6 + $0x18] sm:$0xf] %v847_v0  ;;  %v1140_v0 = vld [vmem:[#allocation7 + $0x770] sm:$0xff] }
 0x1f4   : > { %853 = vst [vmem:[#allocation6 + $0x1c] sm:$0xf] %v852_v3  ;;  %v1038_v3 = vld [vmem:[#allocation7 + $0x440] sm:$0xff] }
 0x1f5   : > { %814 = vst [vmem:[#allocation5 + $0x38] sm:$0xff] %v806_v4  ;;  %v894_v5 = vld [vmem:[#allocation6] sm:$0xff]  ;;  %v1139_v4 = vld [vmem:[#allocation7 + $0x768] sm:$0xff] }
 0x1f6   : > { %1170 = vst [vmem:[#allocation1] ss:$2 sm:$0xff] %v894_v5  ;;  %v1054_v5 = vld [vmem:[#allocation7 + $0x4c0] sm:$0xff] }
 0x1f7   : > { %v895_v6 = vld [vmem:[#allocation6 + $0x8] sm:$0xff] }
 0x1f8   : > { %1172 = vst [vmem:[#allocation1 + $0x10] ss:$2 sm:$0xff] %v895_v6  ;;  %v1021_v6 = vld [vmem:[#allocation7 + $0x3b8] sm:$0xff] }
 0x1f9   : > { %v896_v7 = vld [vmem:[#allocation6 + $0x10] sm:$0xff] }
 0x1fa   : > { %1174 = vst [vmem:[#allocation1 + $0x20] ss:$2 sm:$0xff] %v896_v7  ;;  %v1037_v7 = vld [vmem:[#allocation7 + $0x438] sm:$0xff] }
 0x1fb   : > { %v897_v39 = vld [vmem:[#allocation6 + $0x18] sm:$0xff] }
 0x1fc   : > { %v856_v13 = vld [vmem:[#allocation5 + $0x8] ss:$16 sm:$0xc]  ;;  %v861_v14 = vld [vmem:[#allocation5 + $0x9] ss:$16 sm:$0xc] }
 0x1fd   : > { %v857_v16 = vor.u32 %v856_v13, %v855_v8  ;;  %v862_v17 = vor.u32 %v861_v14, %v860_v9  ;;  %v866_v18 = vld [vmem:[#allocation5 + $0xa] ss:$16 sm:$0xc]  ;;  %v871_v19 = vld [vmem:[#allocation5 + $0xb] ss:$16 sm:$0xc] }
 0x1fe   : > { %v867_v21 = vor.u32 %v866_v18, %v865_v10  ;;  %v872_v22 = vor.u32 %v871_v19, %v870_v11  ;;  %v876_v23 = vld [vmem:[#allocation5 + $0xc] ss:$16 sm:$0xc]  ;;  %v881_v24 = vld [vmem:[#allocation5 + $0xd] ss:$16 sm:$0xc] }
 0x1ff   : > { %858 = vst [vmem:[#allocation6 + $0x20] sm:$0xf] %v857_v16  ;;  %v877_v26 = vor.u32 %v876_v23, %v875_v12  ;;  %v886_v27 = vld [vmem:[#allocation5 + $0xe] ss:$16 sm:$0xc]  ;;  %v882_v29 = vor.u32 %v881_v24, %v880_v15  ;;  %v1138_v10 = vld [vmem:[#allocation7 + $0x760] sm:$0xff] }
 0x200   : > { %863 = vst [vmem:[#allocation6 + $0x24] sm:$0xf] %v862_v17  ;;  %v891_v63 = vld [vmem:[#allocation5 + $0xf] ss:$16 sm:$0xc]  ;;  %v887_v31 = vor.u32 %v886_v27, %v885_v20  ;;  %v1020_v13 = vld [vmem:[#allocation7 + $0x3b0] sm:$0xff] }
 0x201   : > { %868 = vst [vmem:[#allocation6 + $0x28] sm:$0xf] %v867_v21  ;;  %v1177_v32 = vld.sshfl [vmem:[#allocation1] sm:$0xff pattern:$0x75316420]  ;;  %v892_v34 = vor.u32 %v891_v63, %v890_v25  ;;  %v1036_v15 = vld [vmem:[#allocation7 + $0x430] sm:$0xff] }
 0x202   : > { %873 = vst [vmem:[#allocation6 + $0x2c] sm:$0xf] %v872_v22  ;;  %1229 = vmatmul.f32.vlgmr.msrb.gmra.mxu0 %v1177_v32  ;;  %v1178_v35 = vld.sshfl [vmem:[#allocation1 + $0x8] sm:$0xff pattern:$0x75316420]  ;;  %v1053_v11 = vld [vmem:[#allocation7 + $0x4b8] sm:$0xff] }
 0x203   : > { %878 = vst [vmem:[#allocation6 + $0x30] sm:$0xf] %v877_v26  ;;  %1249 = vmatmul.f32.vlgmr.msrb.gmra.mxu2 %v1178_v35  ;;  %v1179_v37 = vld.sshfl [vmem:[#allocation1 + $0x10] sm:$0xff pattern:$0x75316420]  ;;  %1353 = vmatpush.msrb.mxu0 %v1029_v28  ;;  %v1137_v14 = vld [vmem:[#allocation7 + $0x758] sm:$0xff] }
 0x204   : > { %883 = vst [vmem:[#allocation6 + $0x34] sm:$0xf] %v882_v29  ;;  %1269 = vmatmul.f32.vlgmr.msrb.gmra.mxu3 %v1179_v37  ;;  %1373 = vmatpush.msrb.mxu2 %v1045_v30  ;;  %v1180_v47 = vld.sshfl [vmem:[#allocation1 + $0x18] sm:$0xff pattern:$0x75316420]  ;;  %v1019_v17 = vld [vmem:[#allocation7 + $0x3a8] sm:$0xff] }
 0x205   : > { %888 = vst [vmem:[#allocation6 + $0x38] sm:$0xf] %v887_v31  ;;  %1393 = vmatpush.msrb.mxu3 %v1061_v33  ;;  %1354 = vmatpush.msrb.mxu0 %v1028_v36  ;;  %v1181_v49 = vld.sshfl [vmem:[#allocation1 + $0x20] sm:$0xff pattern:$0x75316420]  ;;  %v1052_v16 = vld [vmem:[#allocation7 + $0x4b0] sm:$0xff] }
 0x206   : > { %893 = vst [vmem:[#allocation6 + $0x3c] sm:$0xf] %v892_v34  ;;  %1374 = vmatpush.msrb.mxu2 %v1044_v38  ;;  %v1182_v51 = vld.sshfl [vmem:[#allocation1 + $0x28] sm:$0xff pattern:$0x75316420]  ;;  %v1136_v18 = vld [vmem:[#allocation7 + $0x750] sm:$0xff] }
 0x207   : > { %v898_v46 = vld [vmem:[#allocation6 + $0x20] sm:$0xff]  ;;  %1176 = vst [vmem:[#allocation1 + $0x30] ss:$2 sm:$0xff] %v897_v39  ;;  %1394 = vmatpush.msrb.mxu3 %v1060_v40  ;;  %1355 = vmatpush.msrb.mxu0 %v1027_v41  ;;  %v1035_v19 = vld [vmem:[#allocation7 + $0x428] sm:$0xff]  ;;  %v1017_v25 = vld [vmem:[#allocation7 + $0x398] sm:$0xff] }
 0x208   : > { %1185 = vst [vmem:[#allocation1] ss:$2 sm:$0xff] %v898_v46  ;;  %1375 = vmatpush.msrb.mxu2 %v1043_v42  ;;  %v1051_v20 = vld [vmem:[#allocation7 + $0x4a8] sm:$0xff]  ;;  %v1018_v21 = vld [vmem:[#allocation7 + $0x3a0] sm:$0xff]  ;;  %v1033_v27 = vld [vmem:[#allocation7 + $0x418] sm:$0xff] }
 0x209   : > { %1395 = vmatpush.msrb.mxu3 %v1059_v43  ;;  %1356 = vmatpush.msrb.mxu0 %v1026_v44  ;;  %v899_v50 = vld [vmem:[#allocation6 + $0x28] sm:$0xff]  ;;  %v1034_v23 = vld [vmem:[#allocation7 + $0x420] sm:$0xff]  ;;  %v1049_v28 = vld [vmem:[#allocation7 + $0x498] sm:$0xff] }
 0x20a   : > { %1376 = vmatpush.msrb.mxu2 %v1042_v45  ;;  %1186 = vst [vmem:[#allocation1 + $0x10] ss:$2 sm:$0xff] %v899_v50  ;;  %1289 = vmatmul.f32.vlgmr.msra.gmra.mxu0 %v1180_v47  ;;  %v1135_v22 = vld [vmem:[#allocation7 + $0x748] sm:$0xff]  ;;  %v1050_v24 = vld [vmem:[#allocation7 + $0x4a0] sm:$0xff]  ;;  %v1016_v29 = vld [vmem:[#allocation7 + $0x390] sm:$0xff] }
 0x20b   : > { %1396 = vmatpush.msrb.mxu3 %v1058_v48  ;;  %1309 = vmatmul.f32.vlgmr.msra.gmra.mxu2 %v1181_v49  ;;  %v900_v55 = vld [vmem:[#allocation6 + $0x30] sm:$0xff]  ;;  %v1134_v26 = vld [vmem:[#allocation7 + $0x740] sm:$0xff]  ;;  %v1133_v63 = vld [vmem:[#allocation7 + $0x738] sm:$0xff] }
 0x20c   : > { %1187 = vst [vmem:[#allocation1 + $0x20] ss:$2 sm:$0xff] %v900_v55  ;;  %1329 = vmatmul.f32.vlgmr.msra.gmra.mxu3 %v1182_v51  ;;  %1357 = vmatpush.msrb.mxu0 %v1025_v52  ;;  %v1032_v30 = vld [vmem:[#allocation7 + $0x410] sm:$0xff]  ;;  %v1015_v32 = vld [vmem:[#allocation7 + $0x388] sm:$0xff]  ;;  %v1014_v36 = vld [vmem:[#allocation7 + $0x380] sm:$0xff] }
 0x20d   : > { %1377 = vmatpush.msrb.mxu2 %v1041_v53  ;;  %1397 = vmatpush.msrb.mxu3 %v1057_v54  ;;  %v901_v8 = vld [vmem:[#allocation6 + $0x38] sm:$0xff]  ;;  %v1048_v31 = vld [vmem:[#allocation7 + $0x490] sm:$0xff]  ;;  %v1031_v34 = vld [vmem:[#allocation7 + $0x408] sm:$0xff] }
 0x20e   : > { %v1183_v60 = vld.sshfl [vmem:[#allocation1 + $0x30] sm:$0xff pattern:$0x75316420]  ;;  %1358 = vmatpush.msrb.mxu0 %v1024_v56  ;;  %v2270_v9 = vld.sshfl [vmem:[#allocation1 + $0x38] sm:$0xff pattern:$0x75316420] }
 0x20f   : > { %1349 = vmatmul.f32.vlgmr.msra.gmra.mxu1 %v1183_v60  ;;  %1378 = vmatpush.msrb.mxu2 %v1040_v57  ;;  %1188 = vst [vmem:[#allocation1 + $0x30] ss:$2 sm:$0xff] %v901_v8  ;;  %v1132_v33 = vld [vmem:[#allocation7 + $0x730] sm:$0xff]  ;;  %v1047_v35 = vld [vmem:[#allocation7 + $0x488] sm:$0xff]  ;;  %v1030_v38 = vld [vmem:[#allocation7 + $0x400] sm:$0xff] }
 0x210   : > { %1493 = vmatpush.msra.mxu1 %v1141_v58  ;;  %1398 = vmatpush.msrb.mxu3 %v1056_v59  ;;  %v1131_v37 = vld [vmem:[#allocation7 + $0x728] sm:$0xff]  ;;  %v1046_v39 = vld [vmem:[#allocation7 + $0x480] sm:$0xff]  ;;  %v1093_v41 = vld [vmem:[#allocation7 + $0x5f8] sm:$0xff] }
 0x211   : > { %1359 = vmatpush.msrb.mxu0 %v1023_v61  ;;  %1379 = vmatpush.msrb.mxu2 %v1039_v62  ;;  %v1191_v12 = vld.sshfl [vmem:[#allocation1 + $0x10] sm:$0xff pattern:$0x75316420]  ;;  %v1130_v40 = vld [vmem:[#allocation7 + $0x720] sm:$0xff]  ;;  %v1129_v42 = vld [vmem:[#allocation7 + $0x718] sm:$0xff] }
 0x212   : > { %1494 = vmatpush.msra.mxu1 %v1140_v0  ;;  %1399 = vmatpush.msrb.mxu3 %v1055_v1  ;;  %v1189_v43 = vld.sshfl [vmem:[#allocation1] sm:$0xff pattern:$0x75316420]  ;;  %v1190_v45 = vld.sshfl [vmem:[#allocation1 + $0x8] sm:$0xff pattern:$0x75316420] }
 0x213   : > { %1360 = vmatpush.msrb.mxu0 %v1022_v2  ;;  %1380 = vmatpush.msrb.mxu2 %v1038_v3  ;;  %v1109_v44 = vld [vmem:[#allocation7 + $0x678] sm:$0xff]  ;;  %v1092_v47 = vld [vmem:[#allocation7 + $0x5f0] sm:$0xff]  ;;  %v1091_v51 = vld [vmem:[#allocation7 + $0x5e8] sm:$0xff] }
 0x214   : > { %1495 = vmatpush.msra.mxu1 %v1139_v4  ;;  %1400 = vmatpush.msrb.mxu3 %v1054_v5  ;;  %v1125_v46 = vld [vmem:[#allocation7 + $0x6f8] sm:$0xff]  ;;  %v1128_v48 = vld [vmem:[#allocation7 + $0x710] sm:$0xff]  ;;  %v1127_v52 = vld [vmem:[#allocation7 + $0x708] sm:$0xff] }
 0x215   : > { %1361 = vmatpush.msrb.mxu0 %v1021_v6  ;;  %1381 = vmatpush.msrb.mxu2 %v1037_v7  ;;  %v1108_v49 = vld [vmem:[#allocation7 + $0x670] sm:$0xff]  ;;  %v1107_v53 = vld [vmem:[#allocation7 + $0x668] sm:$0xff]  ;;  %v1090_v55 = vld [vmem:[#allocation7 + $0x5e0] sm:$0xff] }
 0x216   : > { %1496 = vmatpush.msra.mxu1 %v1138_v10  ;;  %1401 = vmatpush.msrb.mxu3 %v1053_v11  ;;  %v1124_v50 = vld [vmem:[#allocation7 + $0x6f0] sm:$0xff]  ;;  %v1123_v54 = vld [vmem:[#allocation7 + $0x6e8] sm:$0xff]  ;;  %v1126_v56 = vld [vmem:[#allocation7 + $0x700] sm:$0xff] }
 0x217   : > { %1429 = vmatmul.f32.vlgmr.msrb.gmra.mxu1 %v1191_v12  ;;  %1362 = vmatpush.msrb.mxu0 %v1020_v13  ;;  %v1106_v57 = vld [vmem:[#allocation7 + $0x660] sm:$0xff]  ;;  %v1089_v59 = vld [vmem:[#allocation7 + $0x5d8] sm:$0xff]  ;;  %v1195_v61 = vld.sshfl [vmem:[#allocation1 + $0x30] sm:$0xff pattern:$0x75316420] }
 0x218   : > { %1497 = vmatpush.msra.mxu1 %v1137_v14  ;;  %1382 = vmatpush.msrb.mxu2 %v1036_v15  ;;  %v1122_v58 = vld [vmem:[#allocation7 + $0x6e0] sm:$0xff]  ;;  %v1105_v60 = vld [vmem:[#allocation7 + $0x658] sm:$0xff]  ;;  %v1088_v0 = vld [vmem:[#allocation7 + $0x5d0] sm:$0xff] }
 0x219   : > { %1402 = vmatpush.msrb.mxu3 %v1052_v16  ;;  %1363 = vmatpush.msrb.mxu0 %v1019_v17  ;;  %v1121_v62 = vld [vmem:[#allocation7 + $0x6d8] sm:$0xff]  ;;  %v1104_v1 = vld [vmem:[#allocation7 + $0x650] sm:$0xff]  ;;  %v1087_v3 = vld [vmem:[#allocation7 + $0x5c8] sm:$0xff] }
 0x21a   : > { %1498 = vmatpush.msra.mxu1 %v1136_v18  ;;  %1383 = vmatpush.msrb.mxu2 %v1035_v19  ;;  %v1120_v2 = vld [vmem:[#allocation7 + $0x6d0] sm:$0xff]  ;;  %v1103_v4 = vld [vmem:[#allocation7 + $0x648] sm:$0xff]  ;;  %v1086_v6 = vld [vmem:[#allocation7 + $0x5c0] sm:$0xff] }
 0x21b   : > { %1403 = vmatpush.msrb.mxu3 %v1051_v20  ;;  %1364 = vmatpush.msrb.mxu0 %v1018_v21  ;;  %v1119_v5 = vld [vmem:[#allocation7 + $0x6c8] sm:$0xff]  ;;  %v1102_v7 = vld [vmem:[#allocation7 + $0x640] sm:$0xff]  ;;  %v1101_v10 = vld [vmem:[#allocation7 + $0x638] sm:$0xff] }
 0x21c   : > { %1499 = vmatpush.msra.mxu1 %v1135_v22  ;;  %1384 = vmatpush.msrb.mxu2 %v1034_v23  ;;  %v1118_v8 = vld [vmem:[#allocation7 + $0x6c0] sm:$0xff]  ;;  %v1117_v11 = vld [vmem:[#allocation7 + $0x6b8] sm:$0xff]  ;;  %v1084_v12 = vld [vmem:[#allocation7 + $0x5b0] sm:$0xff] }
 0x21d   : > { %1404 = vmatpush.msrb.mxu3 %v1050_v24  ;;  %1365 = vmatpush.msrb.mxu0 %v1017_v25  ;;  %v1100_v13 = vld [vmem:[#allocation7 + $0x630] sm:$0xff]  ;;  %v1083_v15 = vld [vmem:[#allocation7 + $0x5a8] sm:$0xff]  ;;  %v1082_v18 = vld [vmem:[#allocation7 + $0x5a0] sm:$0xff] }
 0x21e   : > { %1500 = vmatpush.msra.mxu1 %v1134_v26  ;;  %1385 = vmatpush.msrb.mxu2 %v1033_v27  ;;  %v1116_v14 = vld [vmem:[#allocation7 + $0x6b0] sm:$0xff]  ;;  %v1099_v16 = vld [vmem:[#allocation7 + $0x628] sm:$0xff]  ;;  %v1098_v19 = vld [vmem:[#allocation7 + $0x620] sm:$0xff] }
 0x21f   : > { %1405 = vmatpush.msrb.mxu3 %v1049_v28  ;;  %1366 = vmatpush.msrb.mxu0 %v1016_v29  ;;  %v1115_v17 = vld [vmem:[#allocation7 + $0x6a8] sm:$0xff]  ;;  %v1114_v20 = vld [vmem:[#allocation7 + $0x6a0] sm:$0xff]  ;;  %v1081_v21 = vld [vmem:[#allocation7 + $0x598] sm:$0xff] }
 0x220   : > { %1501 = vmatpush.msra.mxu1 %v1133_v63  ;;  %1386 = vmatpush.msrb.mxu2 %v1032_v30  ;;  %v1097_v22 = vld [vmem:[#allocation7 + $0x618] sm:$0xff]  ;;  %v1080_v24 = vld [vmem:[#allocation7 + $0x590] sm:$0xff]  ;;  %v1079_v27 = vld [vmem:[#allocation7 + $0x588] sm:$0xff] }
 0x221   : > { %1406 = vmatpush.msrb.mxu3 %v1048_v31  ;;  %1367 = vmatpush.msrb.mxu0 %v1015_v32  ;;  %v1113_v23 = vld [vmem:[#allocation7 + $0x698] sm:$0xff]  ;;  %v1096_v25 = vld [vmem:[#allocation7 + $0x610] sm:$0xff]  ;;  %v1095_v28 = vld [vmem:[#allocation7 + $0x608] sm:$0xff] }
 0x222   : > { %1502 = vmatpush.msra.mxu1 %v1132_v33  ;;  %1387 = vmatpush.msrb.mxu2 %v1031_v34  ;;  %v1112_v26 = vld [vmem:[#allocation7 + $0x690] sm:$0xff]  ;;  %v1111_v29 = vld [vmem:[#allocation7 + $0x688] sm:$0xff]  ;;  %v1078_v63 = vld [vmem:[#allocation7 + $0x580] sm:$0xff] }
 0x223   : > { %1407 = vmatpush.msrb.mxu3 %v1047_v35  ;;  %1368 = vmatpush.msrb.mxu0 %v1014_v36  ;;  %v1094_v30 = vld [vmem:[#allocation7 + $0x600] sm:$0xff]  ;;  %v1192_v32 = vld.sshfl [vmem:[#allocation1 + $0x18] sm:$0xff pattern:$0x75316420]  ;;  %v1157_v33 = vld [vmem:[#allocation7 + $0x7f8] sm:$0xff] }
 0x224   : > { %1503 = vmatpush.msra.mxu1 %v1131_v37  ;;  %1388 = vmatpush.msrb.mxu2 %v1030_v38  ;;  %v1110_v31 = vld [vmem:[#allocation7 + $0x680] sm:$0xff]  ;;  %v1193_v34 = vld.sshfl [vmem:[#allocation1 + $0x20] sm:$0xff pattern:$0x75316420]  ;;  %v1156_v36 = vld [vmem:[#allocation7 + $0x7f0] sm:$0xff] }
 0x225   : > { %1408 = vmatpush.msrb.mxu3 %v1046_v39  ;;  %1369 = vmatmul.f32.vlgmr.msrb.gmra.mxu0 %v2270_v9  ;;  %v1085_v9 = vld [vmem:[#allocation7 + $0x5b8] sm:$0xff]  ;;  %v1194_v35 = vld.sshfl [vmem:[#allocation1 + $0x28] sm:$0xff pattern:$0x75316420]  ;;  %v1155_v37 = vld [vmem:[#allocation7 + $0x7e8] sm:$0xff] }
 0x226   : > { %1504 = vmatpush.msra.mxu1 %v1130_v40  ;;  %1389 = vmatmul.f32.vlgmr.msrb.gmra.mxu2 %v1189_v43  ;;  %v1154_v38 = vld [vmem:[#allocation7 + $0x7e0] sm:$0xff]  ;;  %v1153_v39 = vld [vmem:[#allocation7 + $0x7d8] sm:$0xff]  ;;  %v1152_v40 = vld [vmem:[#allocation7 + $0x7d0] sm:$0xff] }
 0x227   : > { %1409 = vmatmul.f32.vlgmr.msrb.gmra.mxu3 %v1190_v45  ;;  %1433 = vmatpush.msra.mxu0 %v1093_v41  ;;  %v1151_v41 = vld [vmem:[#allocation7 + $0x7c8] sm:$0xff]  ;;  %v1149_v43 = vld [vmem:[#allocation7 + $0x7b8] sm:$0xff] }
 0x228   : > { %1505 = vmatpush.msra.mxu1 %v1129_v42  ;;  %1453 = vmatpush.msra.mxu2 %v1109_v44  ;;  %v1150_v42 = vld [vmem:[#allocation7 + $0x7c0] sm:$0xff]  ;;  %v1148_v44 = vld [vmem:[#allocation7 + $0x7b0] sm:$0xff]  ;;  %v1147_v45 = vld [vmem:[#allocation7 + $0x7a8] sm:$0xff] }
 0x229   : > { %1473 = vmatpush.msra.mxu3 %v1125_v46  ;;  %1434 = vmatpush.msra.mxu0 %v1092_v47  ;;  %v1146_v46 = vld [vmem:[#allocation7 + $0x7a0] sm:$0xff]  ;;  %v1145_v47 = vld [vmem:[#allocation7 + $0x798] sm:$0xff] }
 0x22a   : > { %1506 = vmatpush.msra.mxu1 %v1128_v48  ;;  %1454 = vmatpush.msra.mxu2 %v1108_v49  ;;  %v1144_v48 = vld [vmem:[#allocation7 + $0x790] sm:$0xff]  ;;  %v1143_v49 = vld [vmem:[#allocation7 + $0x788] sm:$0xff] }
 0x22b   : > { %1474 = vmatpush.msra.mxu3 %v1124_v50  ;;  %1435 = vmatpush.msra.mxu0 %v1091_v51  ;;  %v1142_v50 = vld [vmem:[#allocation7 + $0x780] sm:$0xff]  ;;  %v1196_v51 = vld.sshfl [vmem:[#allocation1 + $0x38] sm:$0xff pattern:$0x75316420] }
 0x22c   : > { %1507 = vmatpush.msra.mxu1 %v1127_v52  ;;  %1455 = vmatpush.msra.mxu2 %v1107_v53  ;;  %v1735_v52 = vld [vmem:[%s2314_s6] ss:$0 sm:$0xff] }
 0x22d   : > { %1475 = vmatpush.msra.mxu3 %v1123_v54  ;;  %1436 = vmatpush.msra.mxu0 %v1090_v55 }
 0x22e   : > { %1508 = vmatpush.msra.mxu1 %v1126_v56  ;;  %1456 = vmatpush.msra.mxu2 %v1106_v57 }
 0x22f   : > { %1509 = vmatmul.f32.vlgmr.msra.gmra.mxu1 %v1195_v61  ;;  %1476 = vmatpush.msra.mxu3 %v1122_v58 }
 0x230   : > { %1437 = vmatpush.msra.mxu0 %v1089_v59  ;;  %1457 = vmatpush.msra.mxu2 %v1105_v60 }
 0x231   : > { %1477 = vmatpush.msra.mxu3 %v1121_v62 }
 0x232   : > { %1438 = vmatpush.msra.mxu0 %v1088_v0  ;;  %1458 = vmatpush.msra.mxu2 %v1104_v1 }
 0x233   : > { %1478 = vmatpush.msra.mxu3 %v1120_v2 }
 0x234   : > { %1439 = vmatpush.msra.mxu0 %v1087_v3  ;;  %1459 = vmatpush.msra.mxu2 %v1103_v4 }
 0x235   : > { %1479 = vmatpush.msra.mxu3 %v1119_v5 }
 0x236   : > { %1440 = vmatpush.msra.mxu0 %v1086_v6  ;;  %1460 = vmatpush.msra.mxu2 %v1102_v7 }
 0x237   : > { %1480 = vmatpush.msra.mxu3 %v1118_v8 }
 0x238   : > { %1441 = vmatpush.msra.mxu0 %v1085_v9  ;;  %1461 = vmatpush.msra.mxu2 %v1101_v10 }
 0x239   : > { %1481 = vmatpush.msra.mxu3 %v1117_v11 }
 0x23a   : > { %1442 = vmatpush.msra.mxu0 %v1084_v12  ;;  %1462 = vmatpush.msra.mxu2 %v1100_v13 }
 0x23b   : > { %1482 = vmatpush.msra.mxu3 %v1116_v14 }
 0x23c   : > { %1443 = vmatpush.msra.mxu0 %v1083_v15  ;;  %1463 = vmatpush.msra.mxu2 %v1099_v16  ;;  %v1533_v16 = vlaneseq }
 0x23d   : > { %1483 = vmatpush.msra.mxu3 %v1115_v17 }
 0x23e   : > { %1444 = vmatpush.msra.mxu0 %v1082_v18  ;;  %1464 = vmatpush.msra.mxu2 %v1098_v19  ;;  %v1534_v19 = vand.u32 127, %v1533_v16 }
 0x23f   : > { %1484 = vmatpush.msra.mxu3 %v1114_v20 }
 0x240   : > { %1445 = vmatpush.msra.mxu0 %v1081_v21  ;;  %1465 = vmatpush.msra.mxu2 %v1097_v22  ;;  %vm1535_vm2 = vcmp.lt.s32.totalorder %v1534_v19, 10 }
 0x241   : > { %1485 = vmatpush.msra.mxu3 %v1113_v23 }
 0x242   : > { %1446 = vmatpush.msra.mxu0 %v1080_v24  ;;  %1466 = vmatpush.msra.mxu2 %v1096_v25 }
 0x243   : > { %1486 = vmatpush.msra.mxu3 %v1112_v26 }
 0x244   : > { %1447 = vmatpush.msra.mxu0 %v1079_v27  ;;  %1467 = vmatpush.msra.mxu2 %v1095_v28 }
 0x245   : > { %1487 = vmatpush.msra.mxu3 %v1111_v29 }
 0x246   : > { %1448 = vmatpush.msra.mxu0 %v1078_v63  ;;  %1468 = vmatpush.msra.mxu2 %v1094_v30 }
 0x247   : > { %1488 = vmatpush.msra.mxu3 %v1110_v31  ;;  %1449 = vmatmul.f32.vlgmr.msra.gmra.mxu0 %v1192_v32 }
 0x248   : > { %1469 = vmatmul.f32.vlgmr.msra.gmra.mxu2 %v1193_v34  ;;  %1489 = vmatmul.f32.vlgmr.msra.gmra.mxu3 %v1194_v35 }
 0x249   : > { %1513 = vmatpush.msrb.mxu0 %v1157_v33 }
 0x24b   : > { %1514 = vmatpush.msrb.mxu0 %v1156_v36 }
 0x24d   : > { %1515 = vmatpush.msrb.mxu0 %v1155_v37 }
 0x24f   : > { %1516 = vmatpush.msrb.mxu0 %v1154_v38 }
 0x251   : > { %1517 = vmatpush.msrb.mxu0 %v1153_v39 }
 0x253   : > { %1518 = vmatpush.msrb.mxu0 %v1152_v40 }
 0x255   : > { %1519 = vmatpush.msrb.mxu0 %v1151_v41 }
 0x257   : > { %1520 = vmatpush.msrb.mxu0 %v1150_v42 }
 0x259   : > { %1521 = vmatpush.msrb.mxu0 %v1149_v43 }
 0x25b   : > { %1522 = vmatpush.msrb.mxu0 %v1148_v44 }
 0x25d   : > { %1523 = vmatpush.msrb.mxu0 %v1147_v45 }
 0x25f   : > { %1524 = vmatpush.msrb.mxu0 %v1146_v46 }
 0x261   : > { %1525 = vmatpush.msrb.mxu0 %v1145_v47 }
 0x263   : > { %1526 = vmatpush.msrb.mxu0 %v1144_v48 }
 0x265   : > { %1527 = vmatpush.msrb.mxu0 %v1143_v49 }
 0x267   : > { %1528 = vmatpush.msrb.mxu0 %v1142_v50 }
 0x268   : > { %1529 = vmatmul.f32.vlgmr.msrb.gmra.mxu0 %v1196_v51 }
 0x27f   : > { %v1230_v53 = vpop.f32.mrf.mxu0 }
 0x280   : > { %v1231_v55 = vadd.f32 %v1735_v52, %v1230_v53 }
 0x286   : > { %v1250_v54 = vpop.f32.mrf.mxu2 }
 0x287   : > { %v1251_v56 = vadd.f32 %v1250_v54, %v1231_v55  ;;  %v1270_v57 = vpop.f32.mrf.mxu3  ;;  %v1290_v59 = vpop.f32.mrf.mxu0 }
 0x289   : > { %v1271_v58 = vadd.f32 %v1270_v57, %v1251_v56 }
 0x28b   : > { %v1291_v61 = vadd.f32 %v1290_v59, %v1271_v58 }
 0x28c   : > { %v1350_v2 = vpop.f32.mrf.mxu1 }
 0x28e   : > { %v1310_v60 = vpop.f32.mrf.mxu2 }
 0x28f   : > { %v1311_v62 = vadd.f32 %v1310_v60, %v1291_v61  ;;  %v1330_v0 = vpop.f32.mrf.mxu3 }
 0x291   : > { %v1331_v1 = vadd.f32 %v1330_v0, %v1311_v62 }
 0x293   : > { %v1351_v4 = vadd.f32 %v1350_v2, %v1331_v1 }
 0x294   : > { %v1430_v10 = vpop.f32.mrf.mxu1 }
 0x2a2   : > { %v1370_v3 = vpop.f32.mrf.mxu0 }
 0x2a3   : > { %v1371_v6 = vadd.f32 %v1370_v3, %v1351_v4 }
 0x2a9   : > { %v1390_v5 = vpop.f32.mrf.mxu2 }
 0x2aa   : > { %v1391_v7 = vadd.f32 %v1390_v5, %v1371_v6  ;;  %v1410_v8 = vpop.f32.mrf.mxu3 }
 0x2ac   : > { %v1411_v9 = vadd.f32 %v1410_v8, %v1391_v7  ;;  %v1510_v20 = vpop.f32.mrf.mxu1 }
 0x2ae   : > { %v1431_v12 = vadd.f32 %v1430_v10, %v1411_v9 }
 0x2c4   : > { %v1450_v11 = vpop.f32.mrf.mxu0 }
 0x2c5   : > { %v1451_v14 = vadd.f32 %v1450_v11, %v1431_v12 }
 0x2cb   : > { %v1470_v13 = vpop.f32.mrf.mxu2  ;;  %v1490_v17 = vpop.f32.mrf.mxu3 }
 0x2cc   : > { %v1471_v15 = vadd.f32 %v1470_v13, %v1451_v14 }
 0x2ce   : > { %v1491_v18 = vadd.f32 %v1490_v17, %v1471_v15 }
 0x2d0   : > { %v1511_v21 = vadd.f32 %v1510_v20, %v1491_v18 }
 0x2e5   : > { %v1530_v22 = vpop.f32.mrf.mxu0 }
 0x2e6   : > { %v1531_v23 = vadd.f32 %v1530_v22, %v1511_v21 }
 0x2e8   : > { %v1536_v24 = vsel %vm1535_vm2, %v1531_v23, -1e+30 }
 0x2e9   : > { %v1538_v25 = vsel %vm1537_vm3, %v1536_v24, -inf }
 0x2ea   : > { %1539 = vmax.xlane.f32.xlu2 %v1538_v25 }
 0x35d   : > { %v1540_v26 = vpop.xlane.xlu2 %1539 }
 0x35e   : > { %v1541_v27 = vsub.f32 %v1536_v24, %v1540_v26 }
 0x360   : > { %v1542_v28 = vmul.f32 1.442695, %v1541_v27 }
 0x362   : > { %1736 = vpow2.f32 %v1542_v28 }
 0x368   : > { %v1737_v29 = vpop.eup %1736 }
 0x369   : > { %v1544_v63 = vsel %vm1537_vm3, %v1737_v29, 0.0 }
 0x36a   : > { %1545 = vadd.xlane.f32.xlu0 %v1544_v63 }
 0x3dd   : > { %v1546_v30 = vpop.xlane.xlu0 %1545 }
 0x3de   : > { %1738 = vrcp.f32 %v1546_v30  ;;  %v1558_v34 = vand.u32 2147483648, %v1546_v30  ;;  %v1556_v36 = vand.u32 2147483647, %v1546_v30  ;;  %vm1552_vm5 = vweird.f32 %v1546_v30 }
 0x3e0   : > { %v1559_v38 = vor.u32 1.1754944e-38, %v1558_v34  ;;  %vm1557_vm7 = vcmp.eq.f32.partialorder %v1556_v36, 8.507059e+37 }
 0x3e4   : > { %v1739_v31 = vpop.eup %1738 }
 0x3e5   : > { %v1548_v32 = vmul.f32 %v1739_v31, %v1546_v30  ;;  %vm1553_vm4 = vweird.f32 %v1739_v31 }
 0x3e6   : > { %vm1554_vm6 = vmor %vm1552_vm5, %vm1553_vm4 }
 0x3e7   : > { %v1549_v33 = vsub.f32 1.0, %v1548_v32 }
 0x3e9   : > { %v1550_v35 = vmul.f32 %v1739_v31, %v1549_v33 }
 0x3eb   : > { %v1551_v37 = vadd.f32 %v1739_v31, %v1550_v35 }
 0x3ed   : > { %v1555_v39 = vsel %vm1554_vm6, %v1739_v31, %v1551_v37 }
 0x3ee   : > { %v1560_v40 = vsel %vm1557_vm7, %v1559_v38, %v1555_v39 }
 0x3ef   : > { %v1561_v41 = vmul.f32 %v1737_v29, %v1560_v40 }
 0x3f1   : > { %1562 = vst [vmem:[%s291_s15] sm:$0xf] %v1561_v41 }
 0x3f2   : > { %1797 = shalt.err (!%p1794_p8)
}
 0x3f3   : > { %1683 = dma.vmem_to_hbm [thread:$0]  (%p1921_p5), %s1577_s16, 64, %s1579_s17, %s1564_s18  }
 0x3f4 PF: > { %p1695_p9 = scmp.ge.s32.totalorder %s1836_s27, 2  ;;  %s1590_s29 = sand.u32 1, %s1824_s24  }
 0x3f5   : > { %s1591_s9 = scalar_lea.sflag [#allocation9], %s1590_s29 }
 0x3f6   : > { %p1690_p10 = pnand %p1695_p9, %p1925_p6 }
 0x3f8   : > { %p1691_p11 = pneg %p1690_p10 }
 0x3fa   : > { %1819 = dma.done.wait (%p1691_p11), %s1591_s9, 64  }
 0x3fb   : > { %1821 = vsyncadd (%p1691_p11), %s1591_s9, 4294967232  ;;  %p18_p12 = scmp.ge.s32.totalorder %s1908_s30, 4   ;;  %s2318_s24 = smov %s1828_s25 }
 0x3fc   : > { %s2319_s25 = smov %s1832_s26  ;;  %s2320_s26 = smov %s1919_s10 }
 0x3fd   : > { %s2321_s27 = smov %s1908_s30  ;;  %20 = sbr.rel (!%p18_p12) target bundleno = 4 (0x4), region = 109 }
 0x402   :  { %1597 = vsyncpa [#allocation8], 1 }
 0x403   :  { %1599 = vsyncpa [#allocation8 + $0x1], 1 }
 0x404   :  { %1600 = vsyncpa [#allocation9], 1 }
 0x405   :  { %1602 = vsyncpa [#allocation9 + $0x1], 1 }

</bundles_post_ra>
